<compile_context>
chip_gen: v7x
topology: tpu7x:2x2x1
jax: 0.10.0
libtpu: 0.0.40
codegen_flags: <defaults>
</compile_context>

<pallas_src>
import jax
import jax.numpy as jnp
from jax.experimental import pallas as pl
from jax.experimental.pallas import tpu as pltpu

BN_EPS = 1e-5
LANE_PAD = 128  # lane-dense width for the dense2 output (>= num_classes)


def head_kernel(x_ref, w1_ref, p_ref, w2_ref, out_ref):
    # relu_1 on the flattened backbone features, then dense1
    # (bf16 inputs, f32 accumulation on the MXU).
    x = jnp.maximum(x_ref[...], 0)
    h = jnp.dot(x, w1_ref[...], preferred_element_type=jnp.float32)

    # Packed small-parameter block: row 0 = b1, 1 = gamma, 2 = beta,
    # row 3 = b2 (zero-padded to LANE_PAD in its first 128 lanes).
    b1 = p_ref[0:1, :]
    gamma = p_ref[1:2, :]
    beta = p_ref[2:3, :]
    b2 = p_ref[3:4, 0:LANE_PAD]

    h = h + b1

    # bn1: BatchNorm1d(512), training-mode batch statistics, folded into a
    # single scale/shift.
    mean = jnp.mean(h, axis=0, keepdims=True)
    var = jnp.mean((h - mean) ** 2, axis=0, keepdims=True)
    scale = gamma * jax.lax.rsqrt(var + BN_EPS)
    shift = beta - mean * scale

    # relu_2
    h = jnp.maximum(h * scale + shift, 0.0)

    # dense2 (lane-padded to 128 output cols -> unmasked lane-dense store)
    # + relu_3.  Wrapper slices back to num_classes.
    o = jnp.dot(h.astype(jnp.bfloat16), w2_ref[...],
                preferred_element_type=jnp.float32)
    out_ref[...] = jnp.maximum(o + b2, 0.0)


def prepare_params(params):
    """One-time conversion: bf16 weights, lane-padded dense2, packed vectors.

    Returns ((w1_bf16, param_block, w2_pad), num_classes) where num_classes is
    a plain Python int (must stay STATIC for the final output slice).
    """
    w1_t, b1, gamma, beta, w2_t, b2 = params
    hidden, num_classes = w2_t.shape
    assert num_classes <= LANE_PAD

    w2_pad = jnp.zeros((hidden, LANE_PAD), jnp.bfloat16)
    w2_pad = w2_pad.at[:, :num_classes].set(w2_t.astype(jnp.bfloat16))

    # Pack b1 / gamma / beta / b2 into a single (8, hidden) f32 block: one DMA
    # instead of four sublane-padded (1, H) transfers.
    pblock = jnp.zeros((8, hidden), jnp.float32)
    pblock = pblock.at[0, :].set(b1.astype(jnp.float32))
    pblock = pblock.at[1, :].set(gamma.astype(jnp.float32))
    pblock = pblock.at[2, :].set(beta.astype(jnp.float32))
    pblock = pblock.at[3, :num_classes].set(b2.astype(jnp.float32))

    return (w1_t.astype(jnp.bfloat16), pblock, w2_pad), int(num_classes)


def resnet_head_forward(x_nchw, prepared, num_classes):
    """x_nchw: (B, 2048, 1, 1) backbone features. Returns (B, num_classes)."""
    w1_t, pblock, w2_pad = prepared
    B = x_nchw.shape[0]

    # x.view(x.size(0), -1), cast to bf16 (MXU input dtype).
    x = x_nchw.reshape(B, -1).astype(jnp.bfloat16)

    # Single invocation (no grid): whole arrays live in VMEM as one block
    # (~2.2 MiB total: 2 MiB bf16 w1 + 128 KiB w2 + small x / params / out).
    out = pl.pallas_call(
        head_kernel,
        out_shape=jax.ShapeDtypeStruct((B, LANE_PAD), jnp.float32),
        compiler_params=pltpu.CompilerParams(
            vmem_limit_bytes=8 * 1024 * 1024,
        ),
    )(x, w1_t, pblock, w2_pad)

    return out[:, :num_classes]


def init_params(key):
    """Deterministic synthetic parameters matching the module's shapes."""
    k1, k2, k3, k4 = jax.random.split(key, 4)
    # nn.Linear(2048, 512): weight (512, 2048) -> stored transposed (2048, 512)
    w1 = jax.random.normal(k1, (512, 2048), jnp.float32) * 0.02
    b1 = jax.random.normal(k2, (512,), jnp.float32) * 0.01
    # nn.BatchNorm1d(512): gamma=1, beta=0 at init
    gamma = jnp.ones((512,), jnp.float32)
    beta = jnp.zeros((512,), jnp.float32)
    # nn.Linear(512, 2): weight (2, 512) -> stored transposed (512, 2)
    w2 = jax.random.normal(k3, (2, 512), jnp.float32) * 0.05
    b2 = jax.random.normal(k4, (2,), jnp.float32) * 0.01
    return (w1.T, b1, gamma, beta, w2.T, b2)


def reference_forward(x_nchw, params):
    """Pure-JAX reference of the head (same bf16-in / f32-accumulate path)."""
    w1_t, b1, gamma, beta, w2_t, b2 = params
    B = x_nchw.shape[0]
    x = x_nchw.reshape(B, -1).astype(jnp.bfloat16)
    x = jnp.maximum(x, 0)
    h = jnp.dot(x, w1_t.astype(jnp.bfloat16),
                preferred_element_type=jnp.float32) + b1
    mean = jnp.mean(h, axis=0, keepdims=True)
    var = jnp.mean((h - mean) ** 2, axis=0, keepdims=True)
    h = (h - mean) * jax.lax.rsqrt(var + BN_EPS) * gamma + beta
    h = jnp.maximum(h, 0.0)
    o = jnp.dot(h.astype(jnp.bfloat16), w2_t.astype(jnp.bfloat16),
                preferred_element_type=jnp.float32) + b2
    return jnp.maximum(o, 0.0)


if __name__ == "__main__":
    key = jax.random.PRNGKey(0)
    kx, kp = jax.random.split(key)

    # Backbone output features: (batch=2, channels=2048, 1, 1), NCHW.
    x = jax.random.normal(kx, (2, 2048, 1, 1), jnp.float32)
    params = init_params(kp)
    prepared, num_classes = prepare_params(params)

    forward = jax.jit(resnet_head_forward, static_argnums=(2,))
    out = forward(x, prepared, num_classes)
    out = jax.block_until_ready(out)

    ref = reference_forward(x, params)
    assert out.shape == (2, 2), out.shape
    # bf16 matmul inputs (f32 accumulation) in both kernel and reference;
    # tolerance relaxed vs a pure-f32 torch path accordingly.
    assert jnp.allclose(out, ref, atol=1e-2, rtol=1e-2), (out, ref)

    print("KERNEL_OK")
</pallas_src>

<mosaic_0001>
module attributes {stable_mosaic.version = 11 : i64} {
  func.func @head_kernel(%arg0: memref<2x2048xbf16, #tpu.memory_space<vmem>>, %arg1: memref<2048x512xbf16, #tpu.memory_space<vmem>>, %arg2: memref<8x512xf32, #tpu.memory_space<vmem>>, %arg3: memref<512x128xbf16, #tpu.memory_space<vmem>>, %arg4: memref<2x128xf32, #tpu.memory_space<vmem>>) attributes {dimension_semantics = [], scalar_prefetch = 0 : i64, scratch_operands = 0 : i64, tpu.core_type = #tpu.core_type<tc>} {
    %c0 = arith.constant 0 : index
    %c0_0 = arith.constant 0 : index
    %0 = vector.load %arg0[%c0, %c0_0] : memref<2x2048xbf16, #tpu.memory_space<vmem>>, vector<2x2048xbf16>
    %cst = arith.constant 0.000000e+00 : bf16
    %1 = vector.broadcast %cst : bf16 to vector<2x2048xbf16>
    %2 = arith.maximumf %0, %1 : vector<2x2048xbf16>
    %c0_1 = arith.constant 0 : index
    %c0_2 = arith.constant 0 : index
    %3 = vector.load %arg1[%c0_1, %c0_2] : memref<2048x512xbf16, #tpu.memory_space<vmem>>, vector<2048x512xbf16>
    %cst_3 = arith.constant dense<0.000000e+00> : vector<2x512xf32>
    %4 = tpu.matmul %2, %3, %cst_3 {dimension_numbers = #tpu.dot_dimension_numbers<[1], [0], [0], [1], [0, 0, 1, 1], [], []>} : vector<2x2048xbf16>, vector<2048x512xbf16>, vector<2x512xf32> -> vector<2x512xf32>
    %c0_4 = arith.constant 0 : index
    %c0_5 = arith.constant 0 : index
    %5 = vector.load %arg2[%c0_4, %c0_5] : memref<8x512xf32, #tpu.memory_space<vmem>>, vector<1x512xf32>
    %c1 = arith.constant 1 : index
    %c0_6 = arith.constant 0 : index
    %6 = vector.load %arg2[%c1, %c0_6] : memref<8x512xf32, #tpu.memory_space<vmem>>, vector<1x512xf32>
    %c2 = arith.constant 2 : index
    %c0_7 = arith.constant 0 : index
    %7 = vector.load %arg2[%c2, %c0_7] : memref<8x512xf32, #tpu.memory_space<vmem>>, vector<1x512xf32>
    %c3 = arith.constant 3 : index
    %c0_8 = arith.constant 0 : index
    %8 = vector.load %arg2[%c3, %c0_8] : memref<8x512xf32, #tpu.memory_space<vmem>>, vector<1x128xf32>
    %9 = vector.broadcast %5 : vector<1x512xf32> to vector<2x512xf32>
    %10 = arith.addf %4, %9 : vector<2x512xf32>
    %cst_9 = arith.constant dense<0.000000e+00> : vector<512xf32>
    %11 = vector.multi_reduction <add>, %10, %cst_9 [0] : vector<2x512xf32> to vector<512xf32>
    %12 = vector.shape_cast %11 : vector<512xf32> to vector<1x512xf32>
    %cst_10 = arith.constant 2.000000e+00 : f32
    %13 = vector.broadcast %cst_10 : f32 to vector<1x512xf32>
    %14 = arith.divf %12, %13 : vector<1x512xf32>
    %15 = vector.broadcast %14 : vector<1x512xf32> to vector<2x512xf32>
    %16 = arith.subf %10, %15 : vector<2x512xf32>
    %17 = arith.mulf %16, %16 : vector<2x512xf32>
    %cst_11 = arith.constant dense<0.000000e+00> : vector<512xf32>
    %18 = vector.multi_reduction <add>, %17, %cst_11 [0] : vector<2x512xf32> to vector<512xf32>
    %19 = vector.shape_cast %18 : vector<512xf32> to vector<1x512xf32>
    %cst_12 = arith.constant 2.000000e+00 : f32
    %20 = vector.broadcast %cst_12 : f32 to vector<1x512xf32>
    %21 = arith.divf %19, %20 : vector<1x512xf32>
    %cst_13 = arith.constant 9.99999974E-6 : f32
    %22 = vector.broadcast %cst_13 : f32 to vector<1x512xf32>
    %23 = arith.addf %21, %22 : vector<1x512xf32>
    %24 = math.rsqrt %23 : vector<1x512xf32>
    %25 = arith.mulf %6, %24 : vector<1x512xf32>
    %26 = arith.mulf %14, %25 : vector<1x512xf32>
    %27 = arith.subf %7, %26 : vector<1x512xf32>
    %28 = vector.broadcast %25 : vector<1x512xf32> to vector<2x512xf32>
    %29 = arith.mulf %10, %28 : vector<2x512xf32>
    %30 = vector.broadcast %27 : vector<1x512xf32> to vector<2x512xf32>
    %31 = arith.addf %29, %30 : vector<2x512xf32>
    %cst_14 = arith.constant 0.000000e+00 : f32
    %32 = vector.broadcast %cst_14 : f32 to vector<2x512xf32>
    %33 = arith.maximumf %31, %32 : vector<2x512xf32>
    %34 = arith.truncf %33 : vector<2x512xf32> to vector<2x512xbf16>
    %c0_15 = arith.constant 0 : index
    %c0_16 = arith.constant 0 : index
    %35 = vector.load %arg3[%c0_15, %c0_16] : memref<512x128xbf16, #tpu.memory_space<vmem>>, vector<512x128xbf16>
    %cst_17 = arith.constant dense<0.000000e+00> : vector<2x128xf32>
    %36 = tpu.matmul %34, %35, %cst_17 {dimension_numbers = #tpu.dot_dimension_numbers<[1], [0], [0], [1], [0, 0, 1, 1], [], []>} : vector<2x512xbf16>, vector<512x128xbf16>, vector<2x128xf32> -> vector<2x128xf32>
    %37 = vector.broadcast %8 : vector<1x128xf32> to vector<2x128xf32>
    %38 = arith.addf %36, %37 : vector<2x128xf32>
    %cst_18 = arith.constant 0.000000e+00 : f32
    %39 = vector.broadcast %cst_18 : f32 to vector<2x128xf32>
    %40 = arith.maximumf %38, %39 : vector<2x128xf32>
    %c0_19 = arith.constant 0 : index
    %c0_20 = arith.constant 0 : index
    %41 = vector.load %arg4[%c0_19, %c0_20] : memref<2x128xf32, #tpu.memory_space<vmem>>, vector<2x128xf32>
    tpu.vector_store %arg4[%c0_19, %c0_20], %40 {strides = array<i32>} : memref<2x128xf32, #tpu.memory_space<vmem>>, vector<2x128xf32>,
    return
  }
}

</mosaic_0001>

<bundles_post_ra>
// kernel: resnet_head_forward.1
= control target key start
LH: loop header
LB: loop body
LE: loop exit
PB: predicated region body
PF: predicated region fallthrough
CT: control target
= control target key end

     0   :  { %9 = vsyncpa [#allocation3], 0  ;;  %s6307_s0 = inlined_call_operand.vmem [shape: bf16[2,2048], index: 0, kind: input, shape index: {}]   ;;  %s6308_s1 = inlined_call_operand.hbm [shape: bf16[2048,512], index: 1, kind: input, shape index: {}]   ;;  %s6309_s2 = inlined_call_operand.hbm [shape: f32[8,512], index: 2, kind: input, shape index: {}]   ;;  %s6310_s3 = inlined_call_operand.hbm [shape: bf16[512,128], index: 3, kind: input, shape index: {}]   ;;  %s6311_s4 = inlined_call_operand.hbm [shape: f32[2,128], index: 4, kind: output, shape index: {}]  }
   0x1   :  { %10 = vsyncpa [#allocation6], 0 }
   0x2   :  { %11 = vsyncpa [#allocation4], 0  ;;  %s6051_s15 = smov [#allocation5]   ;;  %s6052_s17 = smov [#allocation2]  }
   0x3   :  { %s32_s16 = sshll.u32 %s6051_s15, 4  ;;  %s19_s18 = sshll.u32 %s6052_s17, 4  ;;  %s33_s16 = int_to_ptr.vmem [resolvable:$true] %s32_s16  ;;  %s6086_s18 = int_to_ptr.vmem [resolvable:$true] %s19_s18 }
   0x4   :  { %s5957_s21 = scalar_lea.hbm %s6309_s2, 512 }
   0x5   :  { %p5958_p0 = scmp.ne.s32.totalorder %s6309_s2, %s5957_s21  ;;  %p5961_p1 = scmp.lt.u32.totalorder %s5957_s21, %s6309_s2 }
   0x7   :  { %p5963_p2 = pnand %p5961_p1, %p5958_p0 }
   0x9   :  { %5966 = shalt.err (!%p5963_p2)
}
   0xa   :  { %s5967_s26 = scalar_lea.vmem %s33_s16, 512  ;;  %p5972_p4 = scmp.lt.s32.totalorder %s33_s16, %s33_s16 }
   0xb   :  { %p5968_p3 = scmp.ne.s32.totalorder %s33_s16, %s5967_s26  ;;  %p5973_p5 = scmp.lt.s32.totalorder %s5967_s26, %s5967_s26 }
   0xd   :  { %p5974_p6 = por %p5973_p5, %p5972_p4 }
   0xf   :  { %p5975_p7 = pnand %p5974_p6, %p5968_p3 }
  0x11   :  { %5978 = shalt.err (!%p5975_p7)
}
  0x12   :  { %35 = dma.hbm_to_vmem [thread:$0]  %s6309_s2, 512, %s33_s16, [#allocation6]  }
  0x13   :  { %s5979_s5 = scalar_lea.hbm %s6308_s1, 65536 }
  0x14   :  { %p5980_p8 = scmp.ne.s32.totalorder %s6308_s1, %s5979_s5  ;;  %p5983_p9 = scmp.lt.u32.totalorder %s5979_s5, %s6308_s1 }
  0x16   :  { %p5985_p10 = pnand %p5983_p9, %p5980_p8 }
  0x18   :  { %5988 = shalt.err (!%p5985_p10)
}
  0x19   :  { %s5989_s10 = scalar_lea.vmem %s6086_s18, 65536  ;;  %p5994_p12 = scmp.lt.s32.totalorder %s6086_s18, %s6086_s18 }
  0x1a   :  { %p5990_p11 = scmp.ne.s32.totalorder %s6086_s18, %s5989_s10  ;;  %p5995_p13 = scmp.lt.s32.totalorder %s5989_s10, %s5989_s10 }
  0x1c   :  { %p5996_p0 = por %p5995_p13, %p5994_p12 }
  0x1e   :  { %p5997_p1 = pnand %p5996_p0, %p5990_p11 }
  0x20   :  { %6000 = shalt.err (!%p5997_p1)
}
  0x21   :  { %s6053_s2 = smov 256   ;;  %s6054_s11 = smov 16  }
  0x22   :  { %25 = dma.hbm_to_vmem [thread:$0]  %s6308_s1, 65536, %s6086_s18, [#allocation3], %s6053_s2, %s6053_s2, %s6054_s11  }
  0x23   :  { %s6055_s14 = smov [#allocation7]   ;;  %s6001_s19 = scalar_lea.hbm %s6310_s3, 4096 }
  0x24   :  { %s41_s15 = sshll.u32 %s6055_s14, 4  ;;  %p6002_p2 = scmp.ne.s32.totalorder %s6310_s3, %s6001_s19  ;;  %s42_s15 = int_to_ptr.vmem [resolvable:$true] %s41_s15 }
  0x25   :  { %p6005_p3 = scmp.lt.u32.totalorder %s6001_s19, %s6310_s3 }
  0x27   :  { %p6007_p4 = pnand %p6005_p3, %p6002_p2 }
  0x29   :  { %6010 = shalt.err (!%p6007_p4)
}
  0x2a   :  { %s6011_s24 = scalar_lea.vmem %s42_s15, 4096  ;;  %p6016_p6 = scmp.lt.s32.totalorder %s42_s15, %s42_s15 }
  0x2b   :  { %p6012_p5 = scmp.ne.s32.totalorder %s42_s15, %s6011_s24  ;;  %p6017_p7 = scmp.lt.s32.totalorder %s6011_s24, %s6011_s24 }
  0x2d   :  { %p6018_p8 = por %p6017_p7, %p6016_p6 }
  0x2f   :  { %p6019_p9 = pnand %p6018_p8, %p6012_p5 }
  0x31   :  { %6022 = shalt.err (!%p6019_p9)
}
  0x32   :  { %s6056_s1 = smov 64   ;;  %s6057_s18 = smov 4  }
  0x33   :  { %47 = dma.hbm_to_vmem [thread:$0]  %s6310_s3, 4096, %s42_s15, [#allocation6], %s6056_s1, %s6056_s1, %s6057_s18  }
  0x34   :  { %6045 = dma.done.wait [#allocation3], 65536  }
  0x35   :  { %6046 = vsyncadd [#allocation3], 4294901760 }
  0x36   :  { %6047 = dma.done.wait [#allocation6], 4608  }
  0x37   :  { %6048 = vsyncadd [#allocation6], 4294962688  ;;  %v5149_v0 = vld [vmem:[#allocation2 + $0x4] ss:$16 sps:$4 sm:$0xff]   ;;  %v5151_v1 = vld [vmem:[#allocation2 + $0xc] ss:$16 sps:$4 sm:$0xff]   ;;  %v581_v38 = vlaneseq }
  0x38   :  { %3277 = vmatprep.subr.bf16.mxu0 %v5149_v0  ;;  %v5153_v2 = vld [vmem:[#allocation2] ss:$16 sps:$4 sm:$0xff]   ;;  %v5154_v3 = vld [vmem:[#allocation2 + $0x8] ss:$16 sps:$4 sm:$0xff]   ;;  %3605 = vmatprep.subr.bf16.mxu1 %v5151_v1  ;;  %v5155_v4 = vld [vmem:[#allocation2 + $0x24] ss:$16 sps:$4 sm:$0xff]  }
  0x39   :  { %3278 = vmatpush1.bf16.msra.mxu0 %v5153_v2  ;;  %3606 = vmatpush1.bf16.msra.mxu1 %v5154_v3  ;;  %v5157_v5 = vld [vmem:[#allocation2 + $0x2c] ss:$16 sps:$4 sm:$0xff]   ;;  %v5159_v6 = vld [vmem:[#allocation2 + $0x20] ss:$16 sps:$4 sm:$0xff]   ;;  %v5160_v7 = vld [vmem:[#allocation2 + $0x28] ss:$16 sps:$4 sm:$0xff]  }
  0x3a   :  { %3279 = vmatprep.subr.bf16.mxu0 %v5155_v4  ;;  %3607 = vmatprep.subr.bf16.mxu1 %v5157_v5  ;;  %v5161_v8 = vld [vmem:[#allocation2 + $0x44] ss:$16 sps:$4 sm:$0xff]   ;;  %v5163_v9 = vld [vmem:[#allocation2 + $0x4c] ss:$16 sps:$4 sm:$0xff]   ;;  %v5165_v10 = vld [vmem:[#allocation2 + $0x40] ss:$16 sps:$4 sm:$0xff]  }
  0x3b   :  { %v5166_v11 = vld [vmem:[#allocation2 + $0x48] ss:$16 sps:$4 sm:$0xff]   ;;  %v5167_v12 = vld [vmem:[#allocation2 + $0x64] ss:$16 sps:$4 sm:$0xff]   ;;  %v5169_v13 = vld [vmem:[#allocation2 + $0x6c] ss:$16 sps:$4 sm:$0xff]  }
  0x3c   :  { %v5171_v14 = vld [vmem:[#allocation2 + $0x60] ss:$16 sps:$4 sm:$0xff]   ;;  %v5172_v15 = vld [vmem:[#allocation2 + $0x68] ss:$16 sps:$4 sm:$0xff]   ;;  %v5173_v16 = vld [vmem:[#allocation2 + $0x84] ss:$16 sps:$4 sm:$0xff]  }
  0x3d   :  { %3280 = vmatpush1.bf16.msra.mxu0 %v5159_v6  ;;  %3608 = vmatpush1.bf16.msra.mxu1 %v5160_v7  ;;  %v5175_v17 = vld [vmem:[#allocation2 + $0x8c] ss:$16 sps:$4 sm:$0xff]   ;;  %v5177_v18 = vld [vmem:[#allocation2 + $0x80] ss:$16 sps:$4 sm:$0xff]   ;;  %v5178_v19 = vld [vmem:[#allocation2 + $0x88] ss:$16 sps:$4 sm:$0xff]  }
  0x3e   :  { %3281 = vmatprep.subr.bf16.mxu0 %v5161_v8  ;;  %3609 = vmatprep.subr.bf16.mxu1 %v5163_v9  ;;  %v5179_v20 = vld [vmem:[#allocation2 + $0xa4] ss:$16 sps:$4 sm:$0xff]   ;;  %v5181_v21 = vld [vmem:[#allocation2 + $0xac] ss:$16 sps:$4 sm:$0xff]   ;;  %v5183_v22 = vld [vmem:[#allocation2 + $0xa0] ss:$16 sps:$4 sm:$0xff]  }
  0x3f   :  { %v5184_v23 = vld [vmem:[#allocation2 + $0xa8] ss:$16 sps:$4 sm:$0xff]   ;;  %v5185_v24 = vld [vmem:[#allocation2 + $0xc4] ss:$16 sps:$4 sm:$0xff]   ;;  %v5187_v25 = vld [vmem:[#allocation2 + $0xcc] ss:$16 sps:$4 sm:$0xff]  }
  0x40   :  { %v5189_v26 = vld [vmem:[#allocation2 + $0xc0] ss:$16 sps:$4 sm:$0xff]   ;;  %v5190_v27 = vld [vmem:[#allocation2 + $0xc8] ss:$16 sps:$4 sm:$0xff]   ;;  %v5191_v28 = vld [vmem:[#allocation2 + $0xe4] ss:$16 sps:$4 sm:$0xff]  }
  0x41   :  { %3282 = vmatpush1.bf16.msra.mxu0 %v5165_v10  ;;  %3610 = vmatpush1.bf16.msra.mxu1 %v5166_v11  ;;  %v5193_v29 = vld [vmem:[#allocation2 + $0xec] ss:$16 sps:$4 sm:$0xff]   ;;  %v5195_v30 = vld [vmem:[#allocation2 + $0xe0] ss:$16 sps:$4 sm:$0xff]   ;;  %v5196_v31 = vld [vmem:[#allocation2 + $0xe8] ss:$16 sps:$4 sm:$0xff]  }
  0x42   :  { %3283 = vmatprep.subr.bf16.mxu0 %v5167_v12  ;;  %3611 = vmatprep.subr.bf16.mxu1 %v5169_v13  ;;  %v5197_v32 = vld [vmem:[#allocation2 + $0x104] ss:$16 sps:$4 sm:$0xff]   ;;  %v5199_v33 = vld [vmem:[#allocation2 + $0x10c] ss:$16 sps:$4 sm:$0xff]   ;;  %v5201_v34 = vld [vmem:[#allocation2 + $0x100] ss:$16 sps:$4 sm:$0xff]  }
  0x43   :  { %v5202_v35 = vld [vmem:[#allocation2 + $0x108] ss:$16 sps:$4 sm:$0xff]   ;;  %v5203_v36 = vld [vmem:[#allocation2 + $0x124] ss:$16 sps:$4 sm:$0xff]   ;;  %v5205_v37 = vld [vmem:[#allocation2 + $0x12c] ss:$16 sps:$4 sm:$0xff]  }
  0x44   :  { %v6058_v39 = vmov 1966171168   ;;  %v5207_v41 = vld [vmem:[#allocation2 + $0x120] ss:$16 sps:$4 sm:$0xff]   ;;  %v5208_v42 = vld [vmem:[#allocation2 + $0x128] ss:$16 sps:$4 sm:$0xff]  }
  0x45   :  { %3284 = vmatpush1.bf16.msra.mxu0 %v5171_v14  ;;  %3612 = vmatpush1.bf16.msra.mxu1 %v5172_v15  ;;  %v605_v40 = vunpack.c.l.s4 %v6058_v39  ;;  %v5209_v43 = vld [vmem:[#allocation2 + $0x144] ss:$16 sps:$4 sm:$0xff]   ;;  %v5211_v44 = vld [vmem:[#allocation2 + $0x14c] ss:$16 sps:$4 sm:$0xff]   ;;  %v6129_v45 = vshrl.u32 %v581_v38, 7  ;;  %v6059_v54 = vmov 0  }
  0x46   :  { %3285 = vmatprep.subr.bf16.mxu0 %v5173_v16  ;;  %3613 = vmatprep.subr.bf16.mxu1 %v5175_v17  ;;  %v5213_v47 = vld [vmem:[#allocation2 + $0x140] ss:$16 sps:$4 sm:$0xff]   ;;  %v5214_v48 = vld [vmem:[#allocation2 + $0x148] ss:$16 sps:$4 sm:$0xff]   ;;  %v5215_v49 = vld [vmem:[#allocation2 + $0x164] ss:$16 sps:$4 sm:$0xff]  }
  0x47   :  { %v606_v46 = vunpack.c.0.s8 %v605_v40  ;;  %v5217_v50 = vld [vmem:[#allocation2 + $0x16c] ss:$16 sps:$4 sm:$0xff]   ;;  %v58_v52 = vld [vmem:[%s6307_s0] sm:$0xff]  ;;  %v5220_v56 = vld [vmem:[#allocation2 + $0x168] ss:$16 sps:$4 sm:$0xff]   ;;  %vm3933_vm0 = vcmask 1041408  }
  0x48   :  { %v5219_v53 = vld [vmem:[#allocation2 + $0x160] ss:$16 sps:$4 sm:$0xff]   ;;  %v6138_v55 = vmax.bf16 %v6059_v54, %v58_v52  ;;  %v5221_v57 = vld [vmem:[#allocation2 + $0x184] ss:$16 sps:$4 sm:$0xff]   ;;  %v5223_v58 = vld [vmem:[#allocation2 + $0x18c] ss:$16 sps:$4 sm:$0xff]  }
  0x49   :  { %3286 = vmatpush1.bf16.msra.mxu0 %v5177_v18  ;;  %3614 = vmatpush1.bf16.msra.mxu1 %v5178_v19  ;;  %v6132_v51 = vsub.s32 %v606_v46, %v6129_v45  ;;  %v5225_v60 = vld [vmem:[#allocation2 + $0x180] ss:$16 sps:$4 sm:$0xff]   ;;  %v5226_v62 = vld [vmem:[#allocation2 + $0x188] ss:$16 sps:$4 sm:$0xff]   ;;  %v5227_v63 = vld [vmem:[#allocation2 + $0x1a4] ss:$16 sps:$4 sm:$0xff]  }
  0x4a   :  { %3287 = vmatprep.subr.bf16.mxu0 %v5179_v20  ;;  %3615 = vmatprep.subr.bf16.mxu1 %v5181_v21  ;;  %v5229_v0 = vld [vmem:[#allocation2 + $0x1ac] ss:$16 sps:$4 sm:$0xff]   ;;  %v5231_v2 = vld [vmem:[#allocation2 + $0x1a0] ss:$16 sps:$4 sm:$0xff]   ;;  %v5232_v3 = vld [vmem:[#allocation2 + $0x1a8] ss:$16 sps:$4 sm:$0xff]  }
  0x4b   :  { %v610_v59 = vrot.slane %v6138_v55, %v6132_v51  ;;  %v5233_v4 = vld [vmem:[#allocation2 + $0x1c4] ss:$16 sps:$4 sm:$0xff]   ;;  %v5235_v5 = vld [vmem:[#allocation2 + $0x1cc] ss:$16 sps:$4 sm:$0xff]   ;;  %v5237_v6 = vld [vmem:[#allocation2 + $0x1c0] ss:$16 sps:$4 sm:$0xff]  }
  0x4c   :  { %v5238_v7 = vld [vmem:[#allocation2 + $0x1c8] ss:$16 sps:$4 sm:$0xff]   ;;  %v5239_v8 = vld [vmem:[#allocation2 + $0x1e4] ss:$16 sps:$4 sm:$0xff]   ;;  %v5241_v9 = vld [vmem:[#allocation2 + $0x1ec] ss:$16 sps:$4 sm:$0xff]  }
  0x4d   :  { %3288 = vmatpush1.bf16.msra.mxu0 %v5183_v22  ;;  %3616 = vmatpush1.bf16.msra.mxu1 %v5184_v23  ;;  %v618_v61 = vcombine.high %v610_v59, %v610_v59  ;;  %v5243_v10 = vld [vmem:[#allocation2 + $0x1e0] ss:$16 sps:$4 sm:$0xff]   ;;  %v5244_v11 = vld [vmem:[#allocation2 + $0x1e8] ss:$16 sps:$4 sm:$0xff]   ;;  %v5247_v12 = vld [vmem:[#allocation2 + $0x204] ss:$16 sps:$4 sm:$0xff]   ;;  %v6144_v15 = vrot.slane %v610_v59, %v6132_v51 }
  0x4e   :  { %3289 = vmatprep.subr.bf16.mxu0 %v5185_v24  ;;  %3617 = vmatprep.subr.bf16.mxu1 %v5187_v25  ;;  %v5250_v13 = vld [vmem:[#allocation2 + $0x20c] ss:$16 sps:$4 sm:$0xff]   ;;  %v5245_v14 = vld [vmem:[#allocation2 + $0x200] ss:$16 sps:$4 sm:$0xff]   ;;  %v5248_v16 = vld [vmem:[#allocation2 + $0x208] ss:$16 sps:$4 sm:$0xff]  }
  0x4f   :  { %v640_v1 = vrot.slane %v618_v61, %v6132_v51  ;;  %v5253_v17 = vld [vmem:[#allocation2 + $0x224] ss:$16 sps:$4 sm:$0xff]   ;;  %v5256_v18 = vld [vmem:[#allocation2 + $0x22c] ss:$16 sps:$4 sm:$0xff]   ;;  %v5251_v20 = vld [vmem:[#allocation2 + $0x220] ss:$16 sps:$4 sm:$0xff]  }
  0x50   :  { %v5254_v21 = vld [vmem:[#allocation2 + $0x228] ss:$16 sps:$4 sm:$0xff]   ;;  %v5259_v22 = vld [vmem:[#allocation2 + $0x244] ss:$16 sps:$4 sm:$0xff]   ;;  %v5262_v23 = vld [vmem:[#allocation2 + $0x24c] ss:$16 sps:$4 sm:$0xff]  }
  0x51   :  { %3290 = vmatpush1.bf16.msra.mxu0 %v5189_v26  ;;  %3618 = vmatpush1.bf16.msra.mxu1 %v5190_v27  ;;  %v650_v19 = vcombine.high %v640_v1, %v640_v1  ;;  %v5257_v24 = vld [vmem:[#allocation2 + $0x240] ss:$16 sps:$4 sm:$0xff]   ;;  %v5260_v25 = vld [vmem:[#allocation2 + $0x248] ss:$16 sps:$4 sm:$0xff]   ;;  %v5265_v26 = vld [vmem:[#allocation2 + $0x264] ss:$16 sps:$4 sm:$0xff]  }
  0x52   :  { %3291 = vmatprep.subr.bf16.mxu0 %v5191_v28  ;;  %3619 = vmatprep.subr.bf16.mxu1 %v5193_v29  ;;  %v5268_v27 = vld [vmem:[#allocation2 + $0x26c] ss:$16 sps:$4 sm:$0xff]   ;;  %v5263_v28 = vld [vmem:[#allocation2 + $0x260] ss:$16 sps:$4 sm:$0xff]   ;;  %v5266_v29 = vld [vmem:[#allocation2 + $0x268] ss:$16 sps:$4 sm:$0xff]  }
  0x53   :  { %3309 = vmatprep.mubr.bf16.mxu0 %v640_v1  ;;  %3637 = vmatprep.mubr.bf16.mxu1 %v640_v1  ;;  %v5283_v38 = vld [vmem:[#allocation2 + $0x2c4] ss:$16 sps:$4 sm:$0xff]   ;;  %v5286_v39 = vld [vmem:[#allocation2 + $0x2cc] ss:$16 sps:$4 sm:$0xff]   ;;  %v5281_v40 = vld [vmem:[#allocation2 + $0x2c0] ss:$16 sps:$4 sm:$0xff]  }
  0x54   :  { %v5290_v46 = vld [vmem:[#allocation2 + $0x2e8] ss:$16 sps:$4 sm:$0xff]   ;;  %v5301_v52 = vld [vmem:[#allocation2 + $0x324] ss:$16 sps:$4 sm:$0xff]   ;;  %v5310_v59 = vld [vmem:[#allocation2 + $0x34c] ss:$16 sps:$4 sm:$0xff]  }
  0x55   :  { %3292 = vmatpush1.bf16.msra.mxu0 %v5195_v30  ;;  %3620 = vmatpush1.bf16.msra.mxu1 %v5196_v31  ;;  %v5271_v30 = vld [vmem:[#allocation2 + $0x284] ss:$16 sps:$4 sm:$0xff]   ;;  %v5274_v31 = vld [vmem:[#allocation2 + $0x28c] ss:$16 sps:$4 sm:$0xff]   ;;  %v5308_v61 = vld [vmem:[#allocation2 + $0x348] ss:$16 sps:$4 sm:$0xff]  }
  0x56   :  { %3293 = vmatprep.subr.bf16.mxu0 %v5197_v32  ;;  %3621 = vmatprep.subr.bf16.mxu1 %v5199_v33  ;;  %v5269_v32 = vld [vmem:[#allocation2 + $0x280] ss:$16 sps:$4 sm:$0xff]   ;;  %v5272_v33 = vld [vmem:[#allocation2 + $0x288] ss:$16 sps:$4 sm:$0xff]  }
  0x57   :  { %v5314_v1 = vld [vmem:[#allocation2 + $0x368] ss:$16 sps:$4 sm:$0xff]  }
  0x59   :  { %3294 = vmatpush1.bf16.msra.mxu0 %v5201_v34  ;;  %3622 = vmatpush1.bf16.msra.mxu1 %v5202_v35  ;;  %v5277_v34 = vld [vmem:[#allocation2 + $0x2a4] ss:$16 sps:$4 sm:$0xff]   ;;  %v5280_v35 = vld [vmem:[#allocation2 + $0x2ac] ss:$16 sps:$4 sm:$0xff]  }
  0x5a   :  { %3295 = vmatprep.subr.bf16.mxu0 %v5203_v36  ;;  %3623 = vmatprep.subr.bf16.mxu1 %v5205_v37  ;;  %v5275_v36 = vld [vmem:[#allocation2 + $0x2a0] ss:$16 sps:$4 sm:$0xff]   ;;  %v5278_v37 = vld [vmem:[#allocation2 + $0x2a8] ss:$16 sps:$4 sm:$0xff]  }
  0x5d   :  { %3296 = vmatpush1.bf16.msra.mxu0 %v5207_v41  ;;  %3624 = vmatpush1.bf16.msra.mxu1 %v5208_v42  ;;  %v5284_v41 = vld [vmem:[#allocation2 + $0x2c8] ss:$16 sps:$4 sm:$0xff]   ;;  %v5289_v42 = vld [vmem:[#allocation2 + $0x2e4] ss:$16 sps:$4 sm:$0xff]  }
  0x5e   :  { %3297 = vmatprep.subr.bf16.mxu0 %v5209_v43  ;;  %3625 = vmatprep.subr.bf16.mxu1 %v5211_v44  ;;  %v5292_v43 = vld [vmem:[#allocation2 + $0x2ec] ss:$16 sps:$4 sm:$0xff]   ;;  %v5287_v44 = vld [vmem:[#allocation2 + $0x2e0] ss:$16 sps:$4 sm:$0xff]  }
  0x61   :  { %3298 = vmatpush1.bf16.msra.mxu0 %v5213_v47  ;;  %3626 = vmatpush1.bf16.msra.mxu1 %v5214_v48  ;;  %v5295_v47 = vld [vmem:[#allocation2 + $0x304] ss:$16 sps:$4 sm:$0xff]   ;;  %v5298_v48 = vld [vmem:[#allocation2 + $0x30c] ss:$16 sps:$4 sm:$0xff]  }
  0x62   :  { %3299 = vmatprep.subr.bf16.mxu0 %v5215_v49  ;;  %3627 = vmatprep.subr.bf16.mxu1 %v5217_v50  ;;  %v5293_v49 = vld [vmem:[#allocation2 + $0x300] ss:$16 sps:$4 sm:$0xff]   ;;  %v5296_v50 = vld [vmem:[#allocation2 + $0x308] ss:$16 sps:$4 sm:$0xff]  }
  0x65   :  { %3300 = vmatpush1.bf16.msra.mxu0 %v5219_v53  ;;  %3628 = vmatpush1.bf16.msra.mxu1 %v5220_v56  ;;  %v5304_v53 = vld [vmem:[#allocation2 + $0x32c] ss:$16 sps:$4 sm:$0xff]   ;;  %v5299_v56 = vld [vmem:[#allocation2 + $0x320] ss:$16 sps:$4 sm:$0xff]  }
  0x66   :  { %3301 = vmatprep.subr.bf16.mxu0 %v5221_v57  ;;  %3629 = vmatprep.subr.bf16.mxu1 %v5223_v58  ;;  %v5302_v57 = vld [vmem:[#allocation2 + $0x328] ss:$16 sps:$4 sm:$0xff]   ;;  %v5307_v58 = vld [vmem:[#allocation2 + $0x344] ss:$16 sps:$4 sm:$0xff]  }
  0x69   :  { %3302 = vmatpush1.bf16.msra.mxu0 %v5225_v60  ;;  %3630 = vmatpush1.bf16.msra.mxu1 %v5226_v62  ;;  %v5305_v60 = vld [vmem:[#allocation2 + $0x340] ss:$16 sps:$4 sm:$0xff]   ;;  %v5313_v62 = vld [vmem:[#allocation2 + $0x364] ss:$16 sps:$4 sm:$0xff]  }
  0x6a   :  { %3303 = vmatprep.subr.bf16.mxu0 %v5227_v63  ;;  %3631 = vmatprep.subr.bf16.mxu1 %v5229_v0  ;;  %v5316_v63 = vld [vmem:[#allocation2 + $0x36c] ss:$16 sps:$4 sm:$0xff]   ;;  %v5311_v0 = vld [vmem:[#allocation2 + $0x360] ss:$16 sps:$4 sm:$0xff]  }
  0x6d   :  { %3304 = vmatpush1.bf16.msra.mxu0 %v5231_v2  ;;  %3632 = vmatpush1.bf16.msra.mxu1 %v5232_v3  ;;  %v5319_v2 = vld [vmem:[#allocation2 + $0x384] ss:$16 sps:$4 sm:$0xff]   ;;  %v5322_v3 = vld [vmem:[#allocation2 + $0x38c] ss:$16 sps:$4 sm:$0xff]  }
  0x6e   :  { %3305 = vmatprep.subr.bf16.mxu0 %v5233_v4  ;;  %3633 = vmatprep.subr.bf16.mxu1 %v5235_v5  ;;  %v5317_v4 = vld [vmem:[#allocation2 + $0x380] ss:$16 sps:$4 sm:$0xff]   ;;  %v5320_v5 = vld [vmem:[#allocation2 + $0x388] ss:$16 sps:$4 sm:$0xff]  }
  0x71   :  { %3306 = vmatpush1.bf16.msra.mxu0 %v5237_v6  ;;  %3634 = vmatpush1.bf16.msra.mxu1 %v5238_v7  ;;  %v5325_v6 = vld [vmem:[#allocation2 + $0x3a4] ss:$16 sps:$4 sm:$0xff]   ;;  %v5328_v7 = vld [vmem:[#allocation2 + $0x3ac] ss:$16 sps:$4 sm:$0xff]  }
  0x72   :  { %3307 = vmatprep.subr.bf16.mxu0 %v5239_v8  ;;  %3635 = vmatprep.subr.bf16.mxu1 %v5241_v9  ;;  %v5323_v8 = vld [vmem:[#allocation2 + $0x3a0] ss:$16 sps:$4 sm:$0xff]   ;;  %v5326_v9 = vld [vmem:[#allocation2 + $0x3a8] ss:$16 sps:$4 sm:$0xff]  }
  0x75   :  { %3308 = vmatpush1.bf16.msra.mxu0 %v5243_v10  ;;  %3636 = vmatpush1.bf16.msra.mxu1 %v5244_v11  ;;  %v5331_v10 = vld [vmem:[#allocation2 + $0x3c4] ss:$16 sps:$4 sm:$0xff]   ;;  %v5334_v11 = vld [vmem:[#allocation2 + $0x3cc] ss:$16 sps:$4 sm:$0xff]  }
  0x76   :  { %3318 = vmatprep.subr.bf16.mxu0 %v5247_v12  ;;  %3646 = vmatprep.subr.bf16.mxu1 %v5250_v13  ;;  %v603_v12 = vcombine.high %v6138_v55, %v6138_v55  ;;  %v5329_v13 = vld [vmem:[#allocation2 + $0x3c0] ss:$16 sps:$4 sm:$0xff]  }
  0x78   :  { %3310 = vmatmul.mubr.bf16.vlgmr.msra.gmra.mrb[0].mxu0 %v6144_v15  ;;  %3638 = vmatmul.mubr.bf16.vlgmr.msra.gmra.mrb[0].mxu1 %v6144_v15 }
  0x79   :  { %3319 = vmatpush1.bf16.msra.mxu0 %v5245_v14  ;;  %3647 = vmatpush1.bf16.msra.mxu1 %v5248_v16  ;;  %v5332_v14 = vld [vmem:[#allocation2 + $0x3c8] ss:$16 sps:$4 sm:$0xff]   ;;  %v5337_v16 = vld [vmem:[#allocation2 + $0x3e4] ss:$16 sps:$4 sm:$0xff]  }
  0x7a   :  { %3320 = vmatprep.subr.bf16.mxu0 %v5253_v17  ;;  %3648 = vmatprep.subr.bf16.mxu1 %v5256_v18  ;;  %v5340_v17 = vld [vmem:[#allocation2 + $0x3ec] ss:$16 sps:$4 sm:$0xff]   ;;  %v6151_v18 = vrot.slane %v603_v12, %v6132_v51  ;;  %v5413_v12 = vld [vmem:[#allocation2 + $0x580] ss:$16 sps:$4 sm:$0xff]  }
  0x7b   :  { %3350 = vmatprep.mubr.bf16.mxu0 %v650_v19  ;;  %3678 = vmatprep.mubr.bf16.mxu1 %v650_v19  ;;  %v5335_v19 = vld [vmem:[#allocation2 + $0x3e0] ss:$16 sps:$4 sm:$0xff]  }
  0x7c   :  { %v619_v55 = vcombine.high %v6151_v18, %v6151_v18 }
  0x7d   :  { %3321 = vmatpush1.bf16.msra.mxu0 %v5251_v20  ;;  %3649 = vmatpush1.bf16.msra.mxu1 %v5254_v21  ;;  %v5338_v20 = vld [vmem:[#allocation2 + $0x3e8] ss:$16 sps:$4 sm:$0xff]   ;;  %v5343_v21 = vld [vmem:[#allocation2 + $0x404] ss:$16 sps:$4 sm:$0xff]  }
  0x7e   :  { %3322 = vmatprep.subr.bf16.mxu0 %v5259_v22  ;;  %3650 = vmatprep.subr.bf16.mxu1 %v5262_v23  ;;  %v5346_v22 = vld [vmem:[#allocation2 + $0x40c] ss:$16 sps:$4 sm:$0xff]   ;;  %v5341_v23 = vld [vmem:[#allocation2 + $0x400] ss:$16 sps:$4 sm:$0xff]  }
  0x81   :  { %3323 = vmatpush1.bf16.msra.mxu0 %v5257_v24  ;;  %3651 = vmatpush1.bf16.msra.mxu1 %v5260_v25  ;;  %v648_v24 = vcombine.high %v6144_v15, %v6144_v15  ;;  %v5344_v25 = vld [vmem:[#allocation2 + $0x408] ss:$16 sps:$4 sm:$0xff]   ;;  %v5358_v15 = vld [vmem:[#allocation2 + $0x44c] ss:$16 sps:$4 sm:$0xff]  }
  0x82   :  { %3324 = vmatprep.subr.bf16.mxu0 %v5265_v26  ;;  %3652 = vmatprep.subr.bf16.mxu1 %v5268_v27  ;;  %v5349_v26 = vld [vmem:[#allocation2 + $0x424] ss:$16 sps:$4 sm:$0xff]   ;;  %v5352_v27 = vld [vmem:[#allocation2 + $0x42c] ss:$16 sps:$4 sm:$0xff]  }
  0x85   :  { %3325 = vmatpush1.bf16.msra.mxu0 %v5263_v28  ;;  %3653 = vmatpush1.bf16.msra.mxu1 %v5266_v29  ;;  %v6158_v28 = vrot.slane %v619_v55, %v6132_v51  ;;  %v5347_v29 = vld [vmem:[#allocation2 + $0x420] ss:$16 sps:$4 sm:$0xff]   ;;  %v5428_v55 = vld [vmem:[#allocation2 + $0x5c8] ss:$16 sps:$4 sm:$0xff]  }
  0x86   :  { %3326 = vmatprep.subr.bf16.mxu0 %v5271_v30  ;;  %3654 = vmatprep.subr.bf16.mxu1 %v5274_v31  ;;  %v5350_v30 = vld [vmem:[#allocation2 + $0x428] ss:$16 sps:$4 sm:$0xff]   ;;  %v5355_v31 = vld [vmem:[#allocation2 + $0x444] ss:$16 sps:$4 sm:$0xff]  }
  0x89   :  { %3327 = vmatpush1.bf16.msra.mxu0 %v5269_v32  ;;  %3655 = vmatpush1.bf16.msra.mxu1 %v5272_v33  ;;  %v5353_v32 = vld [vmem:[#allocation2 + $0x440] ss:$16 sps:$4 sm:$0xff]   ;;  %v5356_v33 = vld [vmem:[#allocation2 + $0x448] ss:$16 sps:$4 sm:$0xff]  }
  0x8a   :  { %3328 = vmatprep.subr.bf16.mxu0 %v5277_v34  ;;  %3656 = vmatprep.subr.bf16.mxu1 %v5280_v35  ;;  %v5361_v34 = vld [vmem:[#allocation2 + $0x464] ss:$16 sps:$4 sm:$0xff]   ;;  %v5364_v35 = vld [vmem:[#allocation2 + $0x46c] ss:$16 sps:$4 sm:$0xff]  }
  0x8d   :  { %3329 = vmatpush1.bf16.msra.mxu0 %v5275_v36  ;;  %3657 = vmatpush1.bf16.msra.mxu1 %v5278_v37  ;;  %v5359_v36 = vld [vmem:[#allocation2 + $0x460] ss:$16 sps:$4 sm:$0xff]   ;;  %v5362_v37 = vld [vmem:[#allocation2 + $0x468] ss:$16 sps:$4 sm:$0xff]  }
  0x8e   :  { %3330 = vmatprep.subr.bf16.mxu0 %v5283_v38  ;;  %3658 = vmatprep.subr.bf16.mxu1 %v5286_v39  ;;  %v5367_v38 = vld [vmem:[#allocation2 + $0x484] ss:$16 sps:$4 sm:$0xff]   ;;  %v5370_v39 = vld [vmem:[#allocation2 + $0x48c] ss:$16 sps:$4 sm:$0xff]  }
  0x91   :  { %3331 = vmatpush1.bf16.msra.mxu0 %v5281_v40  ;;  %3659 = vmatpush1.bf16.msra.mxu1 %v5284_v41  ;;  %v5365_v40 = vld [vmem:[#allocation2 + $0x480] ss:$16 sps:$4 sm:$0xff]   ;;  %v5368_v41 = vld [vmem:[#allocation2 + $0x488] ss:$16 sps:$4 sm:$0xff]  }
  0x92   :  { %3332 = vmatprep.subr.bf16.mxu0 %v5289_v42  ;;  %3660 = vmatprep.subr.bf16.mxu1 %v5292_v43  ;;  %v5373_v42 = vld [vmem:[#allocation2 + $0x4a4] ss:$16 sps:$4 sm:$0xff]   ;;  %v5376_v43 = vld [vmem:[#allocation2 + $0x4ac] ss:$16 sps:$4 sm:$0xff]  }
  0x95   :  { %3333 = vmatpush1.bf16.msra.mxu0 %v5287_v44  ;;  %3661 = vmatpush1.bf16.msra.mxu1 %v5290_v46  ;;  %v5371_v44 = vld [vmem:[#allocation2 + $0x4a0] ss:$16 sps:$4 sm:$0xff]   ;;  %v5374_v46 = vld [vmem:[#allocation2 + $0x4a8] ss:$16 sps:$4 sm:$0xff]  }
  0x96   :  { %3334 = vmatprep.subr.bf16.mxu0 %v5295_v47  ;;  %3662 = vmatprep.subr.bf16.mxu1 %v5298_v48  ;;  %v5379_v47 = vld [vmem:[#allocation2 + $0x4c4] ss:$16 sps:$4 sm:$0xff]   ;;  %v5382_v48 = vld [vmem:[#allocation2 + $0x4cc] ss:$16 sps:$4 sm:$0xff]  }
  0x99   :  { %3335 = vmatpush1.bf16.msra.mxu0 %v5293_v49  ;;  %3663 = vmatpush1.bf16.msra.mxu1 %v5296_v50  ;;  %v5377_v49 = vld [vmem:[#allocation2 + $0x4c0] ss:$16 sps:$4 sm:$0xff]   ;;  %v5380_v50 = vld [vmem:[#allocation2 + $0x4c8] ss:$16 sps:$4 sm:$0xff]  }
  0x9a   :  { %3336 = vmatprep.subr.bf16.mxu0 %v5301_v52  ;;  %3664 = vmatprep.subr.bf16.mxu1 %v5304_v53  ;;  %v5385_v52 = vld [vmem:[#allocation2 + $0x4e4] ss:$16 sps:$4 sm:$0xff]   ;;  %v5388_v53 = vld [vmem:[#allocation2 + $0x4ec] ss:$16 sps:$4 sm:$0xff]  }
  0x9d   :  { %3337 = vmatpush1.bf16.msra.mxu0 %v5299_v56  ;;  %3665 = vmatpush1.bf16.msra.mxu1 %v5302_v57  ;;  %v5383_v56 = vld [vmem:[#allocation2 + $0x4e0] ss:$16 sps:$4 sm:$0xff]   ;;  %v5386_v57 = vld [vmem:[#allocation2 + $0x4e8] ss:$16 sps:$4 sm:$0xff]  }
  0x9e   :  { %3338 = vmatprep.subr.bf16.mxu0 %v5307_v58  ;;  %3666 = vmatprep.subr.bf16.mxu1 %v5310_v59  ;;  %v5391_v58 = vld [vmem:[#allocation2 + $0x504] ss:$16 sps:$4 sm:$0xff]   ;;  %v5394_v59 = vld [vmem:[#allocation2 + $0x50c] ss:$16 sps:$4 sm:$0xff]  }
  0xa1   :  { %3339 = vmatpush1.bf16.msra.mxu0 %v5305_v60  ;;  %3667 = vmatpush1.bf16.msra.mxu1 %v5308_v61  ;;  %v5389_v60 = vld [vmem:[#allocation2 + $0x500] ss:$16 sps:$4 sm:$0xff]   ;;  %v5392_v61 = vld [vmem:[#allocation2 + $0x508] ss:$16 sps:$4 sm:$0xff]  }
  0xa2   :  { %3340 = vmatprep.subr.bf16.mxu0 %v5313_v62  ;;  %3668 = vmatprep.subr.bf16.mxu1 %v5316_v63  ;;  %v5397_v62 = vld [vmem:[#allocation2 + $0x524] ss:$16 sps:$4 sm:$0xff]   ;;  %v5400_v63 = vld [vmem:[#allocation2 + $0x52c] ss:$16 sps:$4 sm:$0xff]  }
  0xa5   :  { %3341 = vmatpush1.bf16.msra.mxu0 %v5311_v0  ;;  %3669 = vmatpush1.bf16.msra.mxu1 %v5314_v1  ;;  %v5395_v0 = vld [vmem:[#allocation2 + $0x520] ss:$16 sps:$4 sm:$0xff]   ;;  %v5398_v1 = vld [vmem:[#allocation2 + $0x528] ss:$16 sps:$4 sm:$0xff]  }
  0xa6   :  { %3342 = vmatprep.subr.bf16.mxu0 %v5319_v2  ;;  %3670 = vmatprep.subr.bf16.mxu1 %v5322_v3  ;;  %v5403_v2 = vld [vmem:[#allocation2 + $0x544] ss:$16 sps:$4 sm:$0xff]   ;;  %v5406_v3 = vld [vmem:[#allocation2 + $0x54c] ss:$16 sps:$4 sm:$0xff]  }
  0xa9   :  { %3343 = vmatpush1.bf16.msra.mxu0 %v5317_v4  ;;  %3671 = vmatpush1.bf16.msra.mxu1 %v5320_v5  ;;  %v5401_v4 = vld [vmem:[#allocation2 + $0x540] ss:$16 sps:$4 sm:$0xff]   ;;  %v5404_v5 = vld [vmem:[#allocation2 + $0x548] ss:$16 sps:$4 sm:$0xff]  }
  0xaa   :  { %3344 = vmatprep.subr.bf16.mxu0 %v5325_v6  ;;  %3672 = vmatprep.subr.bf16.mxu1 %v5328_v7  ;;  %v5409_v6 = vld [vmem:[#allocation2 + $0x564] ss:$16 sps:$4 sm:$0xff]   ;;  %v5412_v7 = vld [vmem:[#allocation2 + $0x56c] ss:$16 sps:$4 sm:$0xff]  }
  0xad   :  { %3345 = vmatpush1.bf16.msra.mxu0 %v5323_v8  ;;  %3673 = vmatpush1.bf16.msra.mxu1 %v5326_v9  ;;  %v5407_v8 = vld [vmem:[#allocation2 + $0x560] ss:$16 sps:$4 sm:$0xff]   ;;  %v5410_v9 = vld [vmem:[#allocation2 + $0x568] ss:$16 sps:$4 sm:$0xff]  }
  0xae   :  { %3346 = vmatprep.subr.bf16.mxu0 %v5331_v10  ;;  %3674 = vmatprep.subr.bf16.mxu1 %v5334_v11  ;;  %v5415_v10 = vld [vmem:[#allocation2 + $0x584] ss:$16 sps:$4 sm:$0xff]   ;;  %v5418_v11 = vld [vmem:[#allocation2 + $0x58c] ss:$16 sps:$4 sm:$0xff]  }
  0xb1   :  { %3347 = vmatpush1.bf16.msra.mxu0 %v5329_v13  ;;  %3675 = vmatpush1.bf16.msra.mxu1 %v5332_v14  ;;  %v5416_v13 = vld [vmem:[#allocation2 + $0x588] ss:$16 sps:$4 sm:$0xff]   ;;  %v5421_v14 = vld [vmem:[#allocation2 + $0x5a4] ss:$16 sps:$4 sm:$0xff]  }
  0xb2   :  { %3348 = vmatprep.subr.bf16.mxu0 %v5337_v16  ;;  %3676 = vmatprep.subr.bf16.mxu1 %v5340_v17  ;;  %v5424_v16 = vld [vmem:[#allocation2 + $0x5ac] ss:$16 sps:$4 sm:$0xff]   ;;  %v5419_v17 = vld [vmem:[#allocation2 + $0x5a0] ss:$16 sps:$4 sm:$0xff]  }
  0xb5   :  { %3349 = vmatpush1.bf16.msra.mxu0 %v5335_v19  ;;  %3677 = vmatpush1.bf16.msra.mxu1 %v5338_v20  ;;  %v5422_v19 = vld [vmem:[#allocation2 + $0x5a8] ss:$16 sps:$4 sm:$0xff]   ;;  %v5427_v20 = vld [vmem:[#allocation2 + $0x5c4] ss:$16 sps:$4 sm:$0xff]  }
  0xb6   :  { %3359 = vmatprep.subr.bf16.mxu0 %v5343_v21  ;;  %3687 = vmatprep.subr.bf16.mxu1 %v5346_v22  ;;  %v5430_v21 = vld [vmem:[#allocation2 + $0x5cc] ss:$16 sps:$4 sm:$0xff]   ;;  %v5425_v22 = vld [vmem:[#allocation2 + $0x5c0] ss:$16 sps:$4 sm:$0xff]  }
  0xb8   :  { %3351 = vmatmul.mubr.bf16.vlgmr.msra.gmra.mrb[0].mxu0 %v648_v24  ;;  %3679 = vmatmul.mubr.bf16.vlgmr.msra.gmra.mrb[0].mxu1 %v648_v24  ;;  %v5436_v24 = vld [vmem:[#allocation2 + $0x5ec] ss:$16 sps:$4 sm:$0xff]  }
  0xb9   :  { %3360 = vmatpush1.bf16.msra.mxu0 %v5341_v23  ;;  %3688 = vmatpush1.bf16.msra.mxu1 %v5344_v25  ;;  %v5433_v23 = vld [vmem:[#allocation2 + $0x5e4] ss:$16 sps:$4 sm:$0xff]   ;;  %v5431_v25 = vld [vmem:[#allocation2 + $0x5e0] ss:$16 sps:$4 sm:$0xff]  }
  0xba   :  { %3361 = vmatprep.subr.bf16.mxu0 %v5349_v26  ;;  %3689 = vmatprep.subr.bf16.mxu1 %v5352_v27  ;;  %v5434_v26 = vld [vmem:[#allocation2 + $0x5e8] ss:$16 sps:$4 sm:$0xff]   ;;  %v5439_v27 = vld [vmem:[#allocation2 + $0x604] ss:$16 sps:$4 sm:$0xff]  }
  0xbb   :  { %3391 = vmatprep.mubr.bf16.mxu0 %v6158_v28  ;;  %3719 = vmatprep.mubr.bf16.mxu1 %v6158_v28 }
  0xbd   :  { %3362 = vmatpush1.bf16.msra.mxu0 %v5347_v29  ;;  %3690 = vmatpush1.bf16.msra.mxu1 %v5350_v30  ;;  %v5442_v29 = vld [vmem:[#allocation2 + $0x60c] ss:$16 sps:$4 sm:$0xff]   ;;  %v5437_v30 = vld [vmem:[#allocation2 + $0x600] ss:$16 sps:$4 sm:$0xff]  }
  0xbe   :  { %3363 = vmatprep.subr.bf16.mxu0 %v5355_v31  ;;  %3691 = vmatprep.subr.bf16.mxu1 %v5358_v15  ;;  %v6164_v31 = vrot.slane %v6151_v18, %v6132_v51  ;;  %v5440_v15 = vld [vmem:[#allocation2 + $0x608] ss:$16 sps:$4 sm:$0xff]   ;;  %v5451_v18 = vld [vmem:[#allocation2 + $0x644] ss:$16 sps:$4 sm:$0xff]  }
  0xc1   :  { %3364 = vmatpush1.bf16.msra.mxu0 %v5353_v32  ;;  %3692 = vmatpush1.bf16.msra.mxu1 %v5356_v33  ;;  %v5445_v32 = vld [vmem:[#allocation2 + $0x624] ss:$16 sps:$4 sm:$0xff]   ;;  %v5448_v33 = vld [vmem:[#allocation2 + $0x62c] ss:$16 sps:$4 sm:$0xff]  }
  0xc2   :  { %3365 = vmatprep.subr.bf16.mxu0 %v5361_v34  ;;  %3693 = vmatprep.subr.bf16.mxu1 %v5364_v35  ;;  %v651_v34 = vcombine.high %v6158_v28, %v6158_v28  ;;  %v5443_v35 = vld [vmem:[#allocation2 + $0x620] ss:$16 sps:$4 sm:$0xff]   ;;  %v5457_v28 = vld [vmem:[#allocation2 + $0x664] ss:$16 sps:$4 sm:$0xff]  }
  0xc5   :  { %3366 = vmatpush1.bf16.msra.mxu0 %v5359_v36  ;;  %3694 = vmatpush1.bf16.msra.mxu1 %v5362_v37  ;;  %v5446_v36 = vld [vmem:[#allocation2 + $0x628] ss:$16 sps:$4 sm:$0xff]   ;;  %v5454_v37 = vld [vmem:[#allocation2 + $0x64c] ss:$16 sps:$4 sm:$0xff]  }
  0xc6   :  { %3367 = vmatprep.subr.bf16.mxu0 %v5367_v38  ;;  %3695 = vmatprep.subr.bf16.mxu1 %v5370_v39  ;;  %v5449_v38 = vld [vmem:[#allocation2 + $0x640] ss:$16 sps:$4 sm:$0xff]   ;;  %v5452_v39 = vld [vmem:[#allocation2 + $0x648] ss:$16 sps:$4 sm:$0xff]  }
  0xc9   :  { %3368 = vmatpush1.bf16.msra.mxu0 %v5365_v40  ;;  %3696 = vmatpush1.bf16.msra.mxu1 %v5368_v41  ;;  %v5460_v40 = vld [vmem:[#allocation2 + $0x66c] ss:$16 sps:$4 sm:$0xff]   ;;  %v5455_v41 = vld [vmem:[#allocation2 + $0x660] ss:$16 sps:$4 sm:$0xff]  }
  0xca   :  { %3369 = vmatprep.subr.bf16.mxu0 %v5373_v42  ;;  %3697 = vmatprep.subr.bf16.mxu1 %v5376_v43  ;;  %v5458_v42 = vld [vmem:[#allocation2 + $0x668] ss:$16 sps:$4 sm:$0xff]   ;;  %v5463_v43 = vld [vmem:[#allocation2 + $0x684] ss:$16 sps:$4 sm:$0xff]  }
  0xcd   :  { %3370 = vmatpush1.bf16.msra.mxu0 %v5371_v44  ;;  %3698 = vmatpush1.bf16.msra.mxu1 %v5374_v46  ;;  %v5466_v44 = vld [vmem:[#allocation2 + $0x68c] ss:$16 sps:$4 sm:$0xff]   ;;  %v5461_v46 = vld [vmem:[#allocation2 + $0x680] ss:$16 sps:$4 sm:$0xff]  }
  0xce   :  { %3371 = vmatprep.subr.bf16.mxu0 %v5379_v47  ;;  %3699 = vmatprep.subr.bf16.mxu1 %v5382_v48  ;;  %v5464_v47 = vld [vmem:[#allocation2 + $0x688] ss:$16 sps:$4 sm:$0xff]   ;;  %v5469_v48 = vld [vmem:[#allocation2 + $0x6a4] ss:$16 sps:$4 sm:$0xff]  }
  0xd1   :  { %3372 = vmatpush1.bf16.msra.mxu0 %v5377_v49  ;;  %3700 = vmatpush1.bf16.msra.mxu1 %v5380_v50  ;;  %v5472_v49 = vld [vmem:[#allocation2 + $0x6ac] ss:$16 sps:$4 sm:$0xff]   ;;  %v5467_v50 = vld [vmem:[#allocation2 + $0x6a0] ss:$16 sps:$4 sm:$0xff]  }
  0xd2   :  { %3373 = vmatprep.subr.bf16.mxu0 %v5385_v52  ;;  %3701 = vmatprep.subr.bf16.mxu1 %v5388_v53  ;;  %v5470_v52 = vld [vmem:[#allocation2 + $0x6a8] ss:$16 sps:$4 sm:$0xff]   ;;  %v5475_v53 = vld [vmem:[#allocation2 + $0x6c4] ss:$16 sps:$4 sm:$0xff]  }
  0xd5   :  { %3374 = vmatpush1.bf16.msra.mxu0 %v5383_v56  ;;  %3702 = vmatpush1.bf16.msra.mxu1 %v5386_v57  ;;  %v5478_v56 = vld [vmem:[#allocation2 + $0x6cc] ss:$16 sps:$4 sm:$0xff]   ;;  %v5473_v57 = vld [vmem:[#allocation2 + $0x6c0] ss:$16 sps:$4 sm:$0xff]  }
  0xd6   :  { %3375 = vmatprep.subr.bf16.mxu0 %v5391_v58  ;;  %3703 = vmatprep.subr.bf16.mxu1 %v5394_v59  ;;  %v5476_v58 = vld [vmem:[#allocation2 + $0x6c8] ss:$16 sps:$4 sm:$0xff]   ;;  %v5481_v59 = vld [vmem:[#allocation2 + $0x6e4] ss:$16 sps:$4 sm:$0xff]  }
  0xd9   :  { %3376 = vmatpush1.bf16.msra.mxu0 %v5389_v60  ;;  %3704 = vmatpush1.bf16.msra.mxu1 %v5392_v61  ;;  %v5484_v60 = vld [vmem:[#allocation2 + $0x6ec] ss:$16 sps:$4 sm:$0xff]   ;;  %v5479_v61 = vld [vmem:[#allocation2 + $0x6e0] ss:$16 sps:$4 sm:$0xff]  }
  0xda   :  { %3377 = vmatprep.subr.bf16.mxu0 %v5397_v62  ;;  %3705 = vmatprep.subr.bf16.mxu1 %v5400_v63  ;;  %v5482_v62 = vld [vmem:[#allocation2 + $0x6e8] ss:$16 sps:$4 sm:$0xff]   ;;  %v5487_v63 = vld [vmem:[#allocation2 + $0x704] ss:$16 sps:$4 sm:$0xff]  }
  0xdd   :  { %3378 = vmatpush1.bf16.msra.mxu0 %v5395_v0  ;;  %3706 = vmatpush1.bf16.msra.mxu1 %v5398_v1  ;;  %v5490_v0 = vld [vmem:[#allocation2 + $0x70c] ss:$16 sps:$4 sm:$0xff]   ;;  %v5485_v1 = vld [vmem:[#allocation2 + $0x700] ss:$16 sps:$4 sm:$0xff]  }
  0xde   :  { %3379 = vmatprep.subr.bf16.mxu0 %v5403_v2  ;;  %3707 = vmatprep.subr.bf16.mxu1 %v5406_v3  ;;  %v5488_v2 = vld [vmem:[#allocation2 + $0x708] ss:$16 sps:$4 sm:$0xff]   ;;  %v5493_v3 = vld [vmem:[#allocation2 + $0x724] ss:$16 sps:$4 sm:$0xff]  }
  0xe1   :  { %3380 = vmatpush1.bf16.msra.mxu0 %v5401_v4  ;;  %3708 = vmatpush1.bf16.msra.mxu1 %v5404_v5  ;;  %v5496_v4 = vld [vmem:[#allocation2 + $0x72c] ss:$16 sps:$4 sm:$0xff]   ;;  %v5491_v5 = vld [vmem:[#allocation2 + $0x720] ss:$16 sps:$4 sm:$0xff]  }
  0xe2   :  { %3381 = vmatprep.subr.bf16.mxu0 %v5409_v6  ;;  %3709 = vmatprep.subr.bf16.mxu1 %v5412_v7  ;;  %v5494_v6 = vld [vmem:[#allocation2 + $0x728] ss:$16 sps:$4 sm:$0xff]   ;;  %v5499_v7 = vld [vmem:[#allocation2 + $0x744] ss:$16 sps:$4 sm:$0xff]  }
  0xe5   :  { %3382 = vmatpush1.bf16.msra.mxu0 %v5407_v8  ;;  %3710 = vmatpush1.bf16.msra.mxu1 %v5410_v9  ;;  %v5502_v8 = vld [vmem:[#allocation2 + $0x74c] ss:$16 sps:$4 sm:$0xff]   ;;  %v5497_v9 = vld [vmem:[#allocation2 + $0x740] ss:$16 sps:$4 sm:$0xff]  }
  0xe6   :  { %3383 = vmatprep.subr.bf16.mxu0 %v5415_v10  ;;  %3711 = vmatprep.subr.bf16.mxu1 %v5418_v11  ;;  %v5500_v10 = vld [vmem:[#allocation2 + $0x748] ss:$16 sps:$4 sm:$0xff]   ;;  %v5505_v11 = vld [vmem:[#allocation2 + $0x764] ss:$16 sps:$4 sm:$0xff]  }
  0xe9   :  { %3384 = vmatpush1.bf16.msra.mxu0 %v5413_v12  ;;  %3712 = vmatpush1.bf16.msra.mxu1 %v5416_v13  ;;  %v5508_v12 = vld [vmem:[#allocation2 + $0x76c] ss:$16 sps:$4 sm:$0xff]   ;;  %v5503_v13 = vld [vmem:[#allocation2 + $0x760] ss:$16 sps:$4 sm:$0xff]  }
  0xea   :  { %3385 = vmatprep.subr.bf16.mxu0 %v5421_v14  ;;  %3713 = vmatprep.subr.bf16.mxu1 %v5424_v16  ;;  %v5506_v14 = vld [vmem:[#allocation2 + $0x768] ss:$16 sps:$4 sm:$0xff]   ;;  %v5511_v16 = vld [vmem:[#allocation2 + $0x784] ss:$16 sps:$4 sm:$0xff]  }
  0xed   :  { %3386 = vmatpush1.bf16.msra.mxu0 %v5419_v17  ;;  %3714 = vmatpush1.bf16.msra.mxu1 %v5422_v19  ;;  %v5514_v17 = vld [vmem:[#allocation2 + $0x78c] ss:$16 sps:$4 sm:$0xff]   ;;  %v5509_v19 = vld [vmem:[#allocation2 + $0x780] ss:$16 sps:$4 sm:$0xff]  }
  0xee   :  { %3387 = vmatprep.subr.bf16.mxu0 %v5427_v20  ;;  %3715 = vmatprep.subr.bf16.mxu1 %v5430_v21  ;;  %v5512_v20 = vld [vmem:[#allocation2 + $0x788] ss:$16 sps:$4 sm:$0xff]   ;;  %v5517_v21 = vld [vmem:[#allocation2 + $0x7a4] ss:$16 sps:$4 sm:$0xff]  }
  0xf1   :  { %3388 = vmatpush1.bf16.msra.mxu0 %v5425_v22  ;;  %3716 = vmatpush1.bf16.msra.mxu1 %v5428_v55  ;;  %v5520_v22 = vld [vmem:[#allocation2 + $0x7ac] ss:$16 sps:$4 sm:$0xff]  }
  0xf2   :  { %3389 = vmatprep.subr.bf16.mxu0 %v5433_v23  ;;  %3717 = vmatprep.subr.bf16.mxu1 %v5436_v24  ;;  %v59_v55 = vld [vmem:[%s6307_s0 + $0x8] sm:$0xff]  ;;  %v5515_v23 = vld [vmem:[#allocation2 + $0x7a0] ss:$16 sps:$4 sm:$0xff]   ;;  %s6060_s0 = smov [#allocation8]  }
  0xf3   :  { %v5518_v24 = vld [vmem:[#allocation2 + $0x7a8] ss:$16 sps:$4 sm:$0xff]   ;;  %s4481_s30 = sshll.u32 %s6060_s0, 4  ;;  %s4482_s30 = int_to_ptr.vmem [resolvable:$true] %s4481_s30 }
  0xf4   :  { %s6023_s5 = scalar_lea.vmem %s4482_s30, 32  ;;  %p6028_p11 = scmp.lt.s32.totalorder %s4482_s30, %s4482_s30 }
  0xf5   :  { %3390 = vmatpush1.bf16.msra.mxu0 %v5431_v25  ;;  %3718 = vmatpush1.bf16.msra.mxu1 %v5434_v26  ;;  %v5523_v25 = vld [vmem:[#allocation2 + $0x7c4] ss:$16 sps:$4 sm:$0xff]   ;;  %v5526_v26 = vld [vmem:[#allocation2 + $0x7cc] ss:$16 sps:$4 sm:$0xff]   ;;  %p6024_p10 = scmp.ne.s32.totalorder %s4482_s30, %s6023_s5  ;;  %p6029_p12 = scmp.lt.s32.totalorder %s6023_s5, %s6023_s5 }
  0xf6   :  { %3400 = vmatprep.subr.bf16.mxu0 %v5439_v27  ;;  %3728 = vmatprep.subr.bf16.mxu1 %v5442_v29  ;;  %v6174_v27 = vmax.bf16 %v6059_v54, %v59_v55  ;;  %v5521_v29 = vld [vmem:[#allocation2 + $0x7c0] ss:$16 sps:$4 sm:$0xff]   ;;  %v5535_v54 = vld [vmem:[#allocation2 + $0x804] ss:$16 sps:$4 sm:$0xff]  }
  0xf7   :  { %v5599_v55 = vld [vmem:[#allocation2 + $0x960] ss:$16 sps:$4 sm:$0xff]   ;;  %p6030_p13 = por %p6029_p12, %p6028_p11 }
  0xf8   :  { %3392 = vmatmul.mubr.bf16.vlgmr.msra.gmra.mrb[0].mxu0 %v6164_v31  ;;  %3720 = vmatmul.mubr.bf16.vlgmr.msra.gmra.mrb[0].mxu1 %v6164_v31 }
  0xf9   :  { %3401 = vmatpush1.bf16.msra.mxu0 %v5437_v30  ;;  %3729 = vmatpush1.bf16.msra.mxu1 %v5440_v15  ;;  %v5524_v30 = vld [vmem:[#allocation2 + $0x7c8] ss:$16 sps:$4 sm:$0xff]   ;;  %v5529_v15 = vld [vmem:[#allocation2 + $0x7e4] ss:$16 sps:$4 sm:$0xff]   ;;  %p6031_p0 = pnand %p6030_p13, %p6024_p10 }
  0xfa   :  { %3402 = vmatprep.subr.bf16.mxu0 %v5445_v32  ;;  %3730 = vmatprep.subr.bf16.mxu1 %v5448_v33  ;;  %v5532_v32 = vld [vmem:[#allocation2 + $0x7ec] ss:$16 sps:$4 sm:$0xff]   ;;  %v6178_v33 = vrot.slane %v6174_v27, %v6132_v51 }
  0xfb   :  { %3432 = vmatprep.mubr.bf16.mxu0 %v651_v34  ;;  %3760 = vmatprep.mubr.bf16.mxu1 %v651_v34  ;;  %v5527_v34 = vld [vmem:[#allocation2 + $0x7e0] ss:$16 sps:$4 sm:$0xff]  }
  0xfd   :  { %3403 = vmatpush1.bf16.msra.mxu0 %v5443_v35  ;;  %3731 = vmatpush1.bf16.msra.mxu1 %v5446_v36  ;;  %v5530_v35 = vld [vmem:[#allocation2 + $0x7e8] ss:$16 sps:$4 sm:$0xff]   ;;  %v5538_v36 = vld [vmem:[#allocation2 + $0x80c] ss:$16 sps:$4 sm:$0xff]  }
  0xfe   :  { %3404 = vmatprep.subr.bf16.mxu0 %v5451_v18  ;;  %3732 = vmatprep.subr.bf16.mxu1 %v5454_v37  ;;  %v667_v18 = vcombine.high %v6178_v33, %v6178_v33  ;;  %v649_v37 = vcombine.high %v6164_v31, %v6164_v31  ;;  %v5547_v31 = vld [vmem:[#allocation2 + $0x844] ss:$16 sps:$4 sm:$0xff]  }
 0x101   :  { %3405 = vmatpush1.bf16.msra.mxu0 %v5449_v38  ;;  %3733 = vmatpush1.bf16.msra.mxu1 %v5452_v39  ;;  %v5533_v38 = vld [vmem:[#allocation2 + $0x800] ss:$16 sps:$4 sm:$0xff]   ;;  %v5536_v39 = vld [vmem:[#allocation2 + $0x808] ss:$16 sps:$4 sm:$0xff]  }
 0x102   :  { %3406 = vmatprep.subr.bf16.mxu0 %v5457_v28  ;;  %3734 = vmatprep.subr.bf16.mxu1 %v5460_v40  ;;  %v5541_v28 = vld [vmem:[#allocation2 + $0x824] ss:$16 sps:$4 sm:$0xff]   ;;  %v5544_v40 = vld [vmem:[#allocation2 + $0x82c] ss:$16 sps:$4 sm:$0xff]  }
 0x105   :  { %3407 = vmatpush1.bf16.msra.mxu0 %v5455_v41  ;;  %3735 = vmatpush1.bf16.msra.mxu1 %v5458_v42  ;;  %v6185_v41 = vrot.slane %v667_v18, %v6132_v51  ;;  %v5539_v42 = vld [vmem:[#allocation2 + $0x820] ss:$16 sps:$4 sm:$0xff]   ;;  %v5620_v18 = vld [vmem:[#allocation2 + $0x9c8] ss:$16 sps:$4 sm:$0xff]  }
 0x106   :  { %3408 = vmatprep.subr.bf16.mxu0 %v5463_v43  ;;  %3736 = vmatprep.subr.bf16.mxu1 %v5466_v44  ;;  %v5542_v43 = vld [vmem:[#allocation2 + $0x828] ss:$16 sps:$4 sm:$0xff]   ;;  %v5550_v44 = vld [vmem:[#allocation2 + $0x84c] ss:$16 sps:$4 sm:$0xff]  }
 0x109   :  { %3409 = vmatpush1.bf16.msra.mxu0 %v5461_v46  ;;  %3737 = vmatpush1.bf16.msra.mxu1 %v5464_v47  ;;  %v5545_v46 = vld [vmem:[#allocation2 + $0x840] ss:$16 sps:$4 sm:$0xff]   ;;  %v5548_v47 = vld [vmem:[#allocation2 + $0x848] ss:$16 sps:$4 sm:$0xff]  }
 0x10a   :  { %3410 = vmatprep.subr.bf16.mxu0 %v5469_v48  ;;  %3738 = vmatprep.subr.bf16.mxu1 %v5472_v49  ;;  %v5553_v48 = vld [vmem:[#allocation2 + $0x864] ss:$16 sps:$4 sm:$0xff]   ;;  %v5556_v49 = vld [vmem:[#allocation2 + $0x86c] ss:$16 sps:$4 sm:$0xff]  }
 0x10d   :  { %3411 = vmatpush1.bf16.msra.mxu0 %v5467_v50  ;;  %3739 = vmatpush1.bf16.msra.mxu1 %v5470_v52  ;;  %v5551_v50 = vld [vmem:[#allocation2 + $0x860] ss:$16 sps:$4 sm:$0xff]   ;;  %v5554_v52 = vld [vmem:[#allocation2 + $0x868] ss:$16 sps:$4 sm:$0xff]  }
 0x10e   :  { %3412 = vmatprep.subr.bf16.mxu0 %v5475_v53  ;;  %3740 = vmatprep.subr.bf16.mxu1 %v5478_v56  ;;  %v5559_v53 = vld [vmem:[#allocation2 + $0x884] ss:$16 sps:$4 sm:$0xff]   ;;  %v5562_v56 = vld [vmem:[#allocation2 + $0x88c] ss:$16 sps:$4 sm:$0xff]  }
 0x111   :  { %3413 = vmatpush1.bf16.msra.mxu0 %v5473_v57  ;;  %3741 = vmatpush1.bf16.msra.mxu1 %v5476_v58  ;;  %v5557_v57 = vld [vmem:[#allocation2 + $0x880] ss:$16 sps:$4 sm:$0xff]   ;;  %v5560_v58 = vld [vmem:[#allocation2 + $0x888] ss:$16 sps:$4 sm:$0xff]  }
 0x112   :  { %3414 = vmatprep.subr.bf16.mxu0 %v5481_v59  ;;  %3742 = vmatprep.subr.bf16.mxu1 %v5484_v60  ;;  %v5565_v59 = vld [vmem:[#allocation2 + $0x8a4] ss:$16 sps:$4 sm:$0xff]   ;;  %v5568_v60 = vld [vmem:[#allocation2 + $0x8ac] ss:$16 sps:$4 sm:$0xff]  }
 0x115   :  { %3415 = vmatpush1.bf16.msra.mxu0 %v5479_v61  ;;  %3743 = vmatpush1.bf16.msra.mxu1 %v5482_v62  ;;  %v5563_v61 = vld [vmem:[#allocation2 + $0x8a0] ss:$16 sps:$4 sm:$0xff]   ;;  %v5566_v62 = vld [vmem:[#allocation2 + $0x8a8] ss:$16 sps:$4 sm:$0xff]  }
 0x116   :  { %3416 = vmatprep.subr.bf16.mxu0 %v5487_v63  ;;  %3744 = vmatprep.subr.bf16.mxu1 %v5490_v0  ;;  %v5571_v63 = vld [vmem:[#allocation2 + $0x8c4] ss:$16 sps:$4 sm:$0xff]   ;;  %v5574_v0 = vld [vmem:[#allocation2 + $0x8cc] ss:$16 sps:$4 sm:$0xff]  }
 0x119   :  { %3417 = vmatpush1.bf16.msra.mxu0 %v5485_v1  ;;  %3745 = vmatpush1.bf16.msra.mxu1 %v5488_v2  ;;  %v5569_v1 = vld [vmem:[#allocation2 + $0x8c0] ss:$16 sps:$4 sm:$0xff]   ;;  %v5572_v2 = vld [vmem:[#allocation2 + $0x8c8] ss:$16 sps:$4 sm:$0xff]  }
 0x11a   :  { %3418 = vmatprep.subr.bf16.mxu0 %v5493_v3  ;;  %3746 = vmatprep.subr.bf16.mxu1 %v5496_v4  ;;  %v5577_v3 = vld [vmem:[#allocation2 + $0x8e4] ss:$16 sps:$4 sm:$0xff]   ;;  %v5580_v4 = vld [vmem:[#allocation2 + $0x8ec] ss:$16 sps:$4 sm:$0xff]  }
 0x11d   :  { %3419 = vmatpush1.bf16.msra.mxu0 %v5491_v5  ;;  %3747 = vmatpush1.bf16.msra.mxu1 %v5494_v6  ;;  %v5575_v5 = vld [vmem:[#allocation2 + $0x8e0] ss:$16 sps:$4 sm:$0xff]   ;;  %v5578_v6 = vld [vmem:[#allocation2 + $0x8e8] ss:$16 sps:$4 sm:$0xff]  }
 0x11e   :  { %3420 = vmatprep.subr.bf16.mxu0 %v5499_v7  ;;  %3748 = vmatprep.subr.bf16.mxu1 %v5502_v8  ;;  %v5583_v7 = vld [vmem:[#allocation2 + $0x904] ss:$16 sps:$4 sm:$0xff]   ;;  %v5586_v8 = vld [vmem:[#allocation2 + $0x90c] ss:$16 sps:$4 sm:$0xff]  }
 0x121   :  { %3421 = vmatpush1.bf16.msra.mxu0 %v5497_v9  ;;  %3749 = vmatpush1.bf16.msra.mxu1 %v5500_v10  ;;  %v5581_v9 = vld [vmem:[#allocation2 + $0x900] ss:$16 sps:$4 sm:$0xff]   ;;  %v5584_v10 = vld [vmem:[#allocation2 + $0x908] ss:$16 sps:$4 sm:$0xff]  }
 0x122   :  { %3422 = vmatprep.subr.bf16.mxu0 %v5505_v11  ;;  %3750 = vmatprep.subr.bf16.mxu1 %v5508_v12  ;;  %v5589_v11 = vld [vmem:[#allocation2 + $0x924] ss:$16 sps:$4 sm:$0xff]   ;;  %v5592_v12 = vld [vmem:[#allocation2 + $0x92c] ss:$16 sps:$4 sm:$0xff]  }
 0x125   :  { %3423 = vmatpush1.bf16.msra.mxu0 %v5503_v13  ;;  %3751 = vmatpush1.bf16.msra.mxu1 %v5506_v14  ;;  %v5587_v13 = vld [vmem:[#allocation2 + $0x920] ss:$16 sps:$4 sm:$0xff]   ;;  %v5590_v14 = vld [vmem:[#allocation2 + $0x928] ss:$16 sps:$4 sm:$0xff]  }
 0x126   :  { %3424 = vmatprep.subr.bf16.mxu0 %v5511_v16  ;;  %3752 = vmatprep.subr.bf16.mxu1 %v5514_v17  ;;  %v5595_v16 = vld [vmem:[#allocation2 + $0x944] ss:$16 sps:$4 sm:$0xff]   ;;  %v5598_v17 = vld [vmem:[#allocation2 + $0x94c] ss:$16 sps:$4 sm:$0xff]  }
 0x129   :  { %3425 = vmatpush1.bf16.msra.mxu0 %v5509_v19  ;;  %3753 = vmatpush1.bf16.msra.mxu1 %v5512_v20  ;;  %v5593_v19 = vld [vmem:[#allocation2 + $0x940] ss:$16 sps:$4 sm:$0xff]   ;;  %v5596_v20 = vld [vmem:[#allocation2 + $0x948] ss:$16 sps:$4 sm:$0xff]  }
 0x12a   :  { %3426 = vmatprep.subr.bf16.mxu0 %v5517_v21  ;;  %3754 = vmatprep.subr.bf16.mxu1 %v5520_v22  ;;  %v5601_v21 = vld [vmem:[#allocation2 + $0x964] ss:$16 sps:$4 sm:$0xff]   ;;  %v5604_v22 = vld [vmem:[#allocation2 + $0x96c] ss:$16 sps:$4 sm:$0xff]  }
 0x12d   :  { %3427 = vmatpush1.bf16.msra.mxu0 %v5515_v23  ;;  %3755 = vmatpush1.bf16.msra.mxu1 %v5518_v24  ;;  %v5602_v23 = vld [vmem:[#allocation2 + $0x968] ss:$16 sps:$4 sm:$0xff]   ;;  %v5607_v24 = vld [vmem:[#allocation2 + $0x984] ss:$16 sps:$4 sm:$0xff]  }
 0x12e   :  { %3428 = vmatprep.subr.bf16.mxu0 %v5523_v25  ;;  %3756 = vmatprep.subr.bf16.mxu1 %v5526_v26  ;;  %v5610_v25 = vld [vmem:[#allocation2 + $0x98c] ss:$16 sps:$4 sm:$0xff]   ;;  %v5605_v26 = vld [vmem:[#allocation2 + $0x980] ss:$16 sps:$4 sm:$0xff]  }
 0x131   :  { %3429 = vmatpush1.bf16.msra.mxu0 %v5521_v29  ;;  %3757 = vmatpush1.bf16.msra.mxu1 %v5524_v30  ;;  %v5608_v29 = vld [vmem:[#allocation2 + $0x988] ss:$16 sps:$4 sm:$0xff]   ;;  %v5613_v30 = vld [vmem:[#allocation2 + $0x9a4] ss:$16 sps:$4 sm:$0xff]  }
 0x132   :  { %3430 = vmatprep.subr.bf16.mxu0 %v5529_v15  ;;  %3758 = vmatprep.subr.bf16.mxu1 %v5532_v32  ;;  %v5616_v15 = vld [vmem:[#allocation2 + $0x9ac] ss:$16 sps:$4 sm:$0xff]   ;;  %v5611_v32 = vld [vmem:[#allocation2 + $0x9a0] ss:$16 sps:$4 sm:$0xff]  }
 0x135   :  { %3431 = vmatpush1.bf16.msra.mxu0 %v5527_v34  ;;  %3759 = vmatpush1.bf16.msra.mxu1 %v5530_v35  ;;  %v5614_v34 = vld [vmem:[#allocation2 + $0x9a8] ss:$16 sps:$4 sm:$0xff]   ;;  %v5619_v35 = vld [vmem:[#allocation2 + $0x9c4] ss:$16 sps:$4 sm:$0xff]  }
 0x136   :  { %3441 = vmatprep.subr.bf16.mxu0 %v5535_v54  ;;  %3769 = vmatprep.subr.bf16.mxu1 %v5538_v36  ;;  %v5622_v54 = vld [vmem:[#allocation2 + $0x9cc] ss:$16 sps:$4 sm:$0xff]   ;;  %v5617_v36 = vld [vmem:[#allocation2 + $0x9c0] ss:$16 sps:$4 sm:$0xff]  }
 0x138   :  { %3433 = vmatmul.mubr.bf16.vlgmr.msra.gmra.mrb[0].mxu0 %v649_v37  ;;  %3761 = vmatmul.mubr.bf16.vlgmr.msra.gmra.mrb[0].mxu1 %v649_v37  ;;  %v5625_v37 = vld [vmem:[#allocation2 + $0x9e4] ss:$16 sps:$4 sm:$0xff]  }
 0x139   :  { %3442 = vmatpush1.bf16.msra.mxu0 %v5533_v38  ;;  %3770 = vmatpush1.bf16.msra.mxu1 %v5536_v39  ;;  %v5628_v38 = vld [vmem:[#allocation2 + $0x9ec] ss:$16 sps:$4 sm:$0xff]   ;;  %v5623_v39 = vld [vmem:[#allocation2 + $0x9e0] ss:$16 sps:$4 sm:$0xff]  }
 0x13a   :  { %3443 = vmatprep.subr.bf16.mxu0 %v5541_v28  ;;  %3771 = vmatprep.subr.bf16.mxu1 %v5544_v40  ;;  %v5626_v28 = vld [vmem:[#allocation2 + $0x9e8] ss:$16 sps:$4 sm:$0xff]   ;;  %v5631_v40 = vld [vmem:[#allocation2 + $0xa04] ss:$16 sps:$4 sm:$0xff]  }
 0x13b   :  { %3473 = vmatprep.mubr.bf16.mxu0 %v6185_v41  ;;  %3801 = vmatprep.mubr.bf16.mxu1 %v6185_v41 }
 0x13d   :  { %3444 = vmatpush1.bf16.msra.mxu0 %v5539_v42  ;;  %3772 = vmatpush1.bf16.msra.mxu1 %v5542_v43  ;;  %v5634_v42 = vld [vmem:[#allocation2 + $0xa0c] ss:$16 sps:$4 sm:$0xff]   ;;  %v6191_v43 = vrot.slane %v6178_v33, %v6132_v51  ;;  %v5638_v33 = vld [vmem:[#allocation2 + $0xa28] ss:$16 sps:$4 sm:$0xff]  }
 0x13e   :  { %3445 = vmatprep.subr.bf16.mxu0 %v5547_v31  ;;  %3773 = vmatprep.subr.bf16.mxu1 %v5550_v44  ;;  %v5629_v31 = vld [vmem:[#allocation2 + $0xa00] ss:$16 sps:$4 sm:$0xff]   ;;  %v5632_v44 = vld [vmem:[#allocation2 + $0xa08] ss:$16 sps:$4 sm:$0xff]  }
 0x141   :  { %3446 = vmatpush1.bf16.msra.mxu0 %v5545_v46  ;;  %3774 = vmatpush1.bf16.msra.mxu1 %v5548_v47  ;;  %v5637_v46 = vld [vmem:[#allocation2 + $0xa24] ss:$16 sps:$4 sm:$0xff]   ;;  %v5640_v47 = vld [vmem:[#allocation2 + $0xa2c] ss:$16 sps:$4 sm:$0xff]  }
 0x142   :  { %3447 = vmatprep.subr.bf16.mxu0 %v5553_v48  ;;  %3775 = vmatprep.subr.bf16.mxu1 %v5556_v49  ;;  %v699_v48 = vcombine.high %v6185_v41, %v6185_v41  ;;  %v5635_v49 = vld [vmem:[#allocation2 + $0xa20] ss:$16 sps:$4 sm:$0xff]   ;;  %v5649_v41 = vld [vmem:[#allocation2 + $0xa64] ss:$16 sps:$4 sm:$0xff]  }
 0x145   :  { %3448 = vmatpush1.bf16.msra.mxu0 %v5551_v50  ;;  %3776 = vmatpush1.bf16.msra.mxu1 %v5554_v52  ;;  %v5643_v50 = vld [vmem:[#allocation2 + $0xa44] ss:$16 sps:$4 sm:$0xff]   ;;  %v5646_v52 = vld [vmem:[#allocation2 + $0xa4c] ss:$16 sps:$4 sm:$0xff]  }
 0x146   :  { %3449 = vmatprep.subr.bf16.mxu0 %v5559_v53  ;;  %3777 = vmatprep.subr.bf16.mxu1 %v5562_v56  ;;  %v5641_v53 = vld [vmem:[#allocation2 + $0xa40] ss:$16 sps:$4 sm:$0xff]   ;;  %v5644_v56 = vld [vmem:[#allocation2 + $0xa48] ss:$16 sps:$4 sm:$0xff]  }
 0x149   :  { %3450 = vmatpush1.bf16.msra.mxu0 %v5557_v57  ;;  %3778 = vmatpush1.bf16.msra.mxu1 %v5560_v58  ;;  %v5652_v57 = vld [vmem:[#allocation2 + $0xa6c] ss:$16 sps:$4 sm:$0xff]   ;;  %v5647_v58 = vld [vmem:[#allocation2 + $0xa60] ss:$16 sps:$4 sm:$0xff]  }
 0x14a   :  { %3451 = vmatprep.subr.bf16.mxu0 %v5565_v59  ;;  %3779 = vmatprep.subr.bf16.mxu1 %v5568_v60  ;;  %v5650_v59 = vld [vmem:[#allocation2 + $0xa68] ss:$16 sps:$4 sm:$0xff]   ;;  %v5655_v60 = vld [vmem:[#allocation2 + $0xa84] ss:$16 sps:$4 sm:$0xff]  }
 0x14d   :  { %3452 = vmatpush1.bf16.msra.mxu0 %v5563_v61  ;;  %3780 = vmatpush1.bf16.msra.mxu1 %v5566_v62  ;;  %v5658_v61 = vld [vmem:[#allocation2 + $0xa8c] ss:$16 sps:$4 sm:$0xff]   ;;  %v5653_v62 = vld [vmem:[#allocation2 + $0xa80] ss:$16 sps:$4 sm:$0xff]  }
 0x14e   :  { %3453 = vmatprep.subr.bf16.mxu0 %v5571_v63  ;;  %3781 = vmatprep.subr.bf16.mxu1 %v5574_v0  ;;  %v5656_v63 = vld [vmem:[#allocation2 + $0xa88] ss:$16 sps:$4 sm:$0xff]   ;;  %v5661_v0 = vld [vmem:[#allocation2 + $0xaa4] ss:$16 sps:$4 sm:$0xff]  }
 0x151   :  { %3454 = vmatpush1.bf16.msra.mxu0 %v5569_v1  ;;  %3782 = vmatpush1.bf16.msra.mxu1 %v5572_v2  ;;  %v5664_v1 = vld [vmem:[#allocation2 + $0xaac] ss:$16 sps:$4 sm:$0xff]   ;;  %v5659_v2 = vld [vmem:[#allocation2 + $0xaa0] ss:$16 sps:$4 sm:$0xff]  }
 0x152   :  { %3455 = vmatprep.subr.bf16.mxu0 %v5577_v3  ;;  %3783 = vmatprep.subr.bf16.mxu1 %v5580_v4  ;;  %v5662_v3 = vld [vmem:[#allocation2 + $0xaa8] ss:$16 sps:$4 sm:$0xff]   ;;  %v5667_v4 = vld [vmem:[#allocation2 + $0xac4] ss:$16 sps:$4 sm:$0xff]  }
 0x155   :  { %3456 = vmatpush1.bf16.msra.mxu0 %v5575_v5  ;;  %3784 = vmatpush1.bf16.msra.mxu1 %v5578_v6  ;;  %v5670_v5 = vld [vmem:[#allocation2 + $0xacc] ss:$16 sps:$4 sm:$0xff]   ;;  %v5665_v6 = vld [vmem:[#allocation2 + $0xac0] ss:$16 sps:$4 sm:$0xff]  }
 0x156   :  { %3457 = vmatprep.subr.bf16.mxu0 %v5583_v7  ;;  %3785 = vmatprep.subr.bf16.mxu1 %v5586_v8  ;;  %v5668_v7 = vld [vmem:[#allocation2 + $0xac8] ss:$16 sps:$4 sm:$0xff]   ;;  %v5673_v8 = vld [vmem:[#allocation2 + $0xae4] ss:$16 sps:$4 sm:$0xff]  }
 0x159   :  { %3458 = vmatpush1.bf16.msra.mxu0 %v5581_v9  ;;  %3786 = vmatpush1.bf16.msra.mxu1 %v5584_v10  ;;  %v5676_v9 = vld [vmem:[#allocation2 + $0xaec] ss:$16 sps:$4 sm:$0xff]   ;;  %v5671_v10 = vld [vmem:[#allocation2 + $0xae0] ss:$16 sps:$4 sm:$0xff]  }
 0x15a   :  { %3459 = vmatprep.subr.bf16.mxu0 %v5589_v11  ;;  %3787 = vmatprep.subr.bf16.mxu1 %v5592_v12  ;;  %v5674_v11 = vld [vmem:[#allocation2 + $0xae8] ss:$16 sps:$4 sm:$0xff]   ;;  %v5679_v12 = vld [vmem:[#allocation2 + $0xb04] ss:$16 sps:$4 sm:$0xff]  }
 0x15d   :  { %3460 = vmatpush1.bf16.msra.mxu0 %v5587_v13  ;;  %3788 = vmatpush1.bf16.msra.mxu1 %v5590_v14  ;;  %v5682_v13 = vld [vmem:[#allocation2 + $0xb0c] ss:$16 sps:$4 sm:$0xff]   ;;  %v5677_v14 = vld [vmem:[#allocation2 + $0xb00] ss:$16 sps:$4 sm:$0xff]  }
 0x15e   :  { %3461 = vmatprep.subr.bf16.mxu0 %v5595_v16  ;;  %3789 = vmatprep.subr.bf16.mxu1 %v5598_v17  ;;  %v5680_v16 = vld [vmem:[#allocation2 + $0xb08] ss:$16 sps:$4 sm:$0xff]   ;;  %v5685_v17 = vld [vmem:[#allocation2 + $0xb24] ss:$16 sps:$4 sm:$0xff]  }
 0x161   :  { %3462 = vmatpush1.bf16.msra.mxu0 %v5593_v19  ;;  %3790 = vmatpush1.bf16.msra.mxu1 %v5596_v20  ;;  %v5688_v19 = vld [vmem:[#allocation2 + $0xb2c] ss:$16 sps:$4 sm:$0xff]   ;;  %v5683_v20 = vld [vmem:[#allocation2 + $0xb20] ss:$16 sps:$4 sm:$0xff]  }
 0x162   :  { %3463 = vmatprep.subr.bf16.mxu0 %v5601_v21  ;;  %3791 = vmatprep.subr.bf16.mxu1 %v5604_v22  ;;  %v5686_v21 = vld [vmem:[#allocation2 + $0xb28] ss:$16 sps:$4 sm:$0xff]   ;;  %v5691_v22 = vld [vmem:[#allocation2 + $0xb44] ss:$16 sps:$4 sm:$0xff]  }
 0x165   :  { %3464 = vmatpush1.bf16.msra.mxu0 %v5599_v55  ;;  %3792 = vmatpush1.bf16.msra.mxu1 %v5602_v23  ;;  %v5694_v55 = vld [vmem:[#allocation2 + $0xb4c] ss:$16 sps:$4 sm:$0xff]   ;;  %v5689_v23 = vld [vmem:[#allocation2 + $0xb40] ss:$16 sps:$4 sm:$0xff]  }
 0x166   :  { %3465 = vmatprep.subr.bf16.mxu0 %v5607_v24  ;;  %3793 = vmatprep.subr.bf16.mxu1 %v5610_v25  ;;  %v5692_v24 = vld [vmem:[#allocation2 + $0xb48] ss:$16 sps:$4 sm:$0xff]   ;;  %v5697_v25 = vld [vmem:[#allocation2 + $0xb64] ss:$16 sps:$4 sm:$0xff]  }
 0x169   :  { %3466 = vmatpush1.bf16.msra.mxu0 %v5605_v26  ;;  %3794 = vmatpush1.bf16.msra.mxu1 %v5608_v29  ;;  %v5700_v26 = vld [vmem:[#allocation2 + $0xb6c] ss:$16 sps:$4 sm:$0xff]   ;;  %v5695_v29 = vld [vmem:[#allocation2 + $0xb60] ss:$16 sps:$4 sm:$0xff]  }
 0x16a   :  { %3467 = vmatprep.subr.bf16.mxu0 %v5613_v30  ;;  %3795 = vmatprep.subr.bf16.mxu1 %v5616_v15  ;;  %v5698_v30 = vld [vmem:[#allocation2 + $0xb68] ss:$16 sps:$4 sm:$0xff]   ;;  %v5703_v15 = vld [vmem:[#allocation2 + $0xb84] ss:$16 sps:$4 sm:$0xff]  }
 0x16d   :  { %3468 = vmatpush1.bf16.msra.mxu0 %v5611_v32  ;;  %3796 = vmatpush1.bf16.msra.mxu1 %v5614_v34  ;;  %v5706_v32 = vld [vmem:[#allocation2 + $0xb8c] ss:$16 sps:$4 sm:$0xff]   ;;  %v5701_v34 = vld [vmem:[#allocation2 + $0xb80] ss:$16 sps:$4 sm:$0xff]  }
 0x16e   :  { %3469 = vmatprep.subr.bf16.mxu0 %v5619_v35  ;;  %3797 = vmatprep.subr.bf16.mxu1 %v5622_v54  ;;  %v5704_v35 = vld [vmem:[#allocation2 + $0xb88] ss:$16 sps:$4 sm:$0xff]   ;;  %v5709_v54 = vld [vmem:[#allocation2 + $0xba4] ss:$16 sps:$4 sm:$0xff]  }
 0x171   :  { %3470 = vmatpush1.bf16.msra.mxu0 %v5617_v36  ;;  %3798 = vmatpush1.bf16.msra.mxu1 %v5620_v18  ;;  %v5712_v36 = vld [vmem:[#allocation2 + $0xbac] ss:$16 sps:$4 sm:$0xff]   ;;  %v5707_v18 = vld [vmem:[#allocation2 + $0xba0] ss:$16 sps:$4 sm:$0xff]  }
 0x172   :  { %3471 = vmatprep.subr.bf16.mxu0 %v5625_v37  ;;  %3799 = vmatprep.subr.bf16.mxu1 %v5628_v38  ;;  %v5710_v37 = vld [vmem:[#allocation2 + $0xba8] ss:$16 sps:$4 sm:$0xff]   ;;  %v5715_v38 = vld [vmem:[#allocation2 + $0xbc4] ss:$16 sps:$4 sm:$0xff]  }
 0x175   :  { %3472 = vmatpush1.bf16.msra.mxu0 %v5623_v39  ;;  %3800 = vmatpush1.bf16.msra.mxu1 %v5626_v28  ;;  %v5718_v39 = vld [vmem:[#allocation2 + $0xbcc] ss:$16 sps:$4 sm:$0xff]   ;;  %v652_v28 = vcombine.high %v6174_v27, %v6174_v27 }
 0x176   :  { %3482 = vmatprep.subr.bf16.mxu0 %v5631_v40  ;;  %3810 = vmatprep.subr.bf16.mxu1 %v5634_v42  ;;  %v5713_v40 = vld [vmem:[#allocation2 + $0xbc0] ss:$16 sps:$4 sm:$0xff]   ;;  %v5716_v42 = vld [vmem:[#allocation2 + $0xbc8] ss:$16 sps:$4 sm:$0xff]  }
 0x178   :  { %3474 = vmatmul.mubr.bf16.vlgmr.msra.gmra.mrb[0].mxu0 %v6191_v43  ;;  %3802 = vmatmul.mubr.bf16.vlgmr.msra.gmra.mrb[0].mxu1 %v6191_v43 }
 0x179   :  { %3483 = vmatpush1.bf16.msra.mxu0 %v5629_v31  ;;  %3811 = vmatpush1.bf16.msra.mxu1 %v5632_v44  ;;  %v5721_v31 = vld [vmem:[#allocation2 + $0xbe4] ss:$16 sps:$4 sm:$0xff]   ;;  %v5724_v44 = vld [vmem:[#allocation2 + $0xbec] ss:$16 sps:$4 sm:$0xff]  }
 0x17a   :  { %3484 = vmatprep.subr.bf16.mxu0 %v5637_v46  ;;  %3812 = vmatprep.subr.bf16.mxu1 %v5640_v47  ;;  %v6200_v46 = vrot.slane %v652_v28, %v6132_v51  ;;  %v5719_v47 = vld [vmem:[#allocation2 + $0xbe0] ss:$16 sps:$4 sm:$0xff]   ;;  %v5800_v28 = vld [vmem:[#allocation2 + $0xd88] ss:$16 sps:$4 sm:$0xff]  }
 0x17b   :  { %3514 = vmatprep.mubr.bf16.mxu0 %v699_v48  ;;  %3842 = vmatprep.mubr.bf16.mxu1 %v699_v48  ;;  %v5722_v48 = vld [vmem:[#allocation2 + $0xbe8] ss:$16 sps:$4 sm:$0xff]  }
 0x17c   :  { %v668_v27 = vcombine.high %v6200_v46, %v6200_v46 }
 0x17d   :  { %3485 = vmatpush1.bf16.msra.mxu0 %v5635_v49  ;;  %3813 = vmatpush1.bf16.msra.mxu1 %v5638_v33  ;;  %v5727_v49 = vld [vmem:[#allocation2 + $0xc04] ss:$16 sps:$4 sm:$0xff]   ;;  %v5730_v33 = vld [vmem:[#allocation2 + $0xc0c] ss:$16 sps:$4 sm:$0xff]  }
 0x17e   :  { %3486 = vmatprep.subr.bf16.mxu0 %v5643_v50  ;;  %3814 = vmatprep.subr.bf16.mxu1 %v5646_v52  ;;  %v697_v50 = vcombine.high %v6191_v43, %v6191_v43  ;;  %v5725_v52 = vld [vmem:[#allocation2 + $0xc00] ss:$16 sps:$4 sm:$0xff]   ;;  %v5739_v43 = vld [vmem:[#allocation2 + $0xc44] ss:$16 sps:$4 sm:$0xff]  }
 0x181   :  { %3487 = vmatpush1.bf16.msra.mxu0 %v5641_v53  ;;  %3815 = vmatpush1.bf16.msra.mxu1 %v5644_v56  ;;  %v5728_v53 = vld [vmem:[#allocation2 + $0xc08] ss:$16 sps:$4 sm:$0xff]   ;;  %v5733_v56 = vld [vmem:[#allocation2 + $0xc24] ss:$16 sps:$4 sm:$0xff]  }
 0x182   :  { %3488 = vmatprep.subr.bf16.mxu0 %v5649_v41  ;;  %3816 = vmatprep.subr.bf16.mxu1 %v5652_v57  ;;  %v5736_v41 = vld [vmem:[#allocation2 + $0xc2c] ss:$16 sps:$4 sm:$0xff]   ;;  %v6207_v57 = vrot.slane %v668_v27, %v6132_v51  ;;  %v5817_v27 = vld [vmem:[#allocation2 + $0xde4] ss:$16 sps:$4 sm:$0xff]  }
 0x185   :  { %3489 = vmatpush1.bf16.msra.mxu0 %v5647_v58  ;;  %3817 = vmatpush1.bf16.msra.mxu1 %v5650_v59  ;;  %v5731_v58 = vld [vmem:[#allocation2 + $0xc20] ss:$16 sps:$4 sm:$0xff]   ;;  %v5734_v59 = vld [vmem:[#allocation2 + $0xc28] ss:$16 sps:$4 sm:$0xff]  }
 0x186   :  { %3490 = vmatprep.subr.bf16.mxu0 %v5655_v60  ;;  %3818 = vmatprep.subr.bf16.mxu1 %v5658_v61  ;;  %v5742_v60 = vld [vmem:[#allocation2 + $0xc4c] ss:$16 sps:$4 sm:$0xff]   ;;  %v5737_v61 = vld [vmem:[#allocation2 + $0xc40] ss:$16 sps:$4 sm:$0xff]  }
 0x189   :  { %3491 = vmatpush1.bf16.msra.mxu0 %v5653_v62  ;;  %3819 = vmatpush1.bf16.msra.mxu1 %v5656_v63  ;;  %v5740_v62 = vld [vmem:[#allocation2 + $0xc48] ss:$16 sps:$4 sm:$0xff]   ;;  %v5745_v63 = vld [vmem:[#allocation2 + $0xc64] ss:$16 sps:$4 sm:$0xff]  }
 0x18a   :  { %3492 = vmatprep.subr.bf16.mxu0 %v5661_v0  ;;  %3820 = vmatprep.subr.bf16.mxu1 %v5664_v1  ;;  %v5748_v0 = vld [vmem:[#allocation2 + $0xc6c] ss:$16 sps:$4 sm:$0xff]   ;;  %v5743_v1 = vld [vmem:[#allocation2 + $0xc60] ss:$16 sps:$4 sm:$0xff]  }
 0x18d   :  { %3493 = vmatpush1.bf16.msra.mxu0 %v5659_v2  ;;  %3821 = vmatpush1.bf16.msra.mxu1 %v5662_v3  ;;  %v5746_v2 = vld [vmem:[#allocation2 + $0xc68] ss:$16 sps:$4 sm:$0xff]   ;;  %v5751_v3 = vld [vmem:[#allocation2 + $0xc84] ss:$16 sps:$4 sm:$0xff]  }
 0x18e   :  { %3494 = vmatprep.subr.bf16.mxu0 %v5667_v4  ;;  %3822 = vmatprep.subr.bf16.mxu1 %v5670_v5  ;;  %v5754_v4 = vld [vmem:[#allocation2 + $0xc8c] ss:$16 sps:$4 sm:$0xff]   ;;  %v5749_v5 = vld [vmem:[#allocation2 + $0xc80] ss:$16 sps:$4 sm:$0xff]  }
 0x191   :  { %3495 = vmatpush1.bf16.msra.mxu0 %v5665_v6  ;;  %3823 = vmatpush1.bf16.msra.mxu1 %v5668_v7  ;;  %v5752_v6 = vld [vmem:[#allocation2 + $0xc88] ss:$16 sps:$4 sm:$0xff]   ;;  %v5757_v7 = vld [vmem:[#allocation2 + $0xca4] ss:$16 sps:$4 sm:$0xff]  }
 0x192   :  { %3496 = vmatprep.subr.bf16.mxu0 %v5673_v8  ;;  %3824 = vmatprep.subr.bf16.mxu1 %v5676_v9  ;;  %v5760_v8 = vld [vmem:[#allocation2 + $0xcac] ss:$16 sps:$4 sm:$0xff]   ;;  %v5755_v9 = vld [vmem:[#allocation2 + $0xca0] ss:$16 sps:$4 sm:$0xff]  }
 0x195   :  { %3497 = vmatpush1.bf16.msra.mxu0 %v5671_v10  ;;  %3825 = vmatpush1.bf16.msra.mxu1 %v5674_v11  ;;  %v5758_v10 = vld [vmem:[#allocation2 + $0xca8] ss:$16 sps:$4 sm:$0xff]   ;;  %v5763_v11 = vld [vmem:[#allocation2 + $0xcc4] ss:$16 sps:$4 sm:$0xff]  }
 0x196   :  { %3498 = vmatprep.subr.bf16.mxu0 %v5679_v12  ;;  %3826 = vmatprep.subr.bf16.mxu1 %v5682_v13  ;;  %v5766_v12 = vld [vmem:[#allocation2 + $0xccc] ss:$16 sps:$4 sm:$0xff]   ;;  %v5761_v13 = vld [vmem:[#allocation2 + $0xcc0] ss:$16 sps:$4 sm:$0xff]  }
 0x199   :  { %3499 = vmatpush1.bf16.msra.mxu0 %v5677_v14  ;;  %3827 = vmatpush1.bf16.msra.mxu1 %v5680_v16  ;;  %v5764_v14 = vld [vmem:[#allocation2 + $0xcc8] ss:$16 sps:$4 sm:$0xff]   ;;  %v5769_v16 = vld [vmem:[#allocation2 + $0xce4] ss:$16 sps:$4 sm:$0xff]  }
 0x19a   :  { %3500 = vmatprep.subr.bf16.mxu0 %v5685_v17  ;;  %3828 = vmatprep.subr.bf16.mxu1 %v5688_v19  ;;  %v5772_v17 = vld [vmem:[#allocation2 + $0xcec] ss:$16 sps:$4 sm:$0xff]   ;;  %v5767_v19 = vld [vmem:[#allocation2 + $0xce0] ss:$16 sps:$4 sm:$0xff]  }
 0x19d   :  { %3501 = vmatpush1.bf16.msra.mxu0 %v5683_v20  ;;  %3829 = vmatpush1.bf16.msra.mxu1 %v5686_v21  ;;  %v5770_v20 = vld [vmem:[#allocation2 + $0xce8] ss:$16 sps:$4 sm:$0xff]   ;;  %v5775_v21 = vld [vmem:[#allocation2 + $0xd04] ss:$16 sps:$4 sm:$0xff]  }
 0x19e   :  { %3502 = vmatprep.subr.bf16.mxu0 %v5691_v22  ;;  %3830 = vmatprep.subr.bf16.mxu1 %v5694_v55  ;;  %v5778_v22 = vld [vmem:[#allocation2 + $0xd0c] ss:$16 sps:$4 sm:$0xff]   ;;  %v5773_v55 = vld [vmem:[#allocation2 + $0xd00] ss:$16 sps:$4 sm:$0xff]  }
 0x1a1   :  { %3503 = vmatpush1.bf16.msra.mxu0 %v5689_v23  ;;  %3831 = vmatpush1.bf16.msra.mxu1 %v5692_v24  ;;  %v5776_v23 = vld [vmem:[#allocation2 + $0xd08] ss:$16 sps:$4 sm:$0xff]   ;;  %v5781_v24 = vld [vmem:[#allocation2 + $0xd24] ss:$16 sps:$4 sm:$0xff]  }
 0x1a2   :  { %3504 = vmatprep.subr.bf16.mxu0 %v5697_v25  ;;  %3832 = vmatprep.subr.bf16.mxu1 %v5700_v26  ;;  %v5784_v25 = vld [vmem:[#allocation2 + $0xd2c] ss:$16 sps:$4 sm:$0xff]   ;;  %v5779_v26 = vld [vmem:[#allocation2 + $0xd20] ss:$16 sps:$4 sm:$0xff]  }
 0x1a5   :  { %3505 = vmatpush1.bf16.msra.mxu0 %v5695_v29  ;;  %3833 = vmatpush1.bf16.msra.mxu1 %v5698_v30  ;;  %v5782_v29 = vld [vmem:[#allocation2 + $0xd28] ss:$16 sps:$4 sm:$0xff]   ;;  %v5787_v30 = vld [vmem:[#allocation2 + $0xd44] ss:$16 sps:$4 sm:$0xff]  }
 0x1a6   :  { %3506 = vmatprep.subr.bf16.mxu0 %v5703_v15  ;;  %3834 = vmatprep.subr.bf16.mxu1 %v5706_v32  ;;  %v5790_v15 = vld [vmem:[#allocation2 + $0xd4c] ss:$16 sps:$4 sm:$0xff]   ;;  %v5785_v32 = vld [vmem:[#allocation2 + $0xd40] ss:$16 sps:$4 sm:$0xff]  }
 0x1a9   :  { %3507 = vmatpush1.bf16.msra.mxu0 %v5701_v34  ;;  %3835 = vmatpush1.bf16.msra.mxu1 %v5704_v35  ;;  %v5788_v34 = vld [vmem:[#allocation2 + $0xd48] ss:$16 sps:$4 sm:$0xff]   ;;  %v5793_v35 = vld [vmem:[#allocation2 + $0xd64] ss:$16 sps:$4 sm:$0xff]  }
 0x1aa   :  { %3508 = vmatprep.subr.bf16.mxu0 %v5709_v54  ;;  %3836 = vmatprep.subr.bf16.mxu1 %v5712_v36  ;;  %v5796_v54 = vld [vmem:[#allocation2 + $0xd6c] ss:$16 sps:$4 sm:$0xff]   ;;  %v5791_v36 = vld [vmem:[#allocation2 + $0xd60] ss:$16 sps:$4 sm:$0xff]  }
 0x1ad   :  { %3509 = vmatpush1.bf16.msra.mxu0 %v5707_v18  ;;  %3837 = vmatpush1.bf16.msra.mxu1 %v5710_v37  ;;  %v5794_v18 = vld [vmem:[#allocation2 + $0xd68] ss:$16 sps:$4 sm:$0xff]   ;;  %v5799_v37 = vld [vmem:[#allocation2 + $0xd84] ss:$16 sps:$4 sm:$0xff]  }
 0x1ae   :  { %3510 = vmatprep.subr.bf16.mxu0 %v5715_v38  ;;  %3838 = vmatprep.subr.bf16.mxu1 %v5718_v39  ;;  %v5802_v38 = vld [vmem:[#allocation2 + $0xd8c] ss:$16 sps:$4 sm:$0xff]   ;;  %v5797_v39 = vld [vmem:[#allocation2 + $0xd80] ss:$16 sps:$4 sm:$0xff]  }
 0x1b1   :  { %3511 = vmatpush1.bf16.msra.mxu0 %v5713_v40  ;;  %3839 = vmatpush1.bf16.msra.mxu1 %v5716_v42  ;;  %v5805_v40 = vld [vmem:[#allocation2 + $0xda4] ss:$16 sps:$4 sm:$0xff]   ;;  %v5808_v42 = vld [vmem:[#allocation2 + $0xdac] ss:$16 sps:$4 sm:$0xff]  }
 0x1b2   :  { %3512 = vmatprep.subr.bf16.mxu0 %v5721_v31  ;;  %3840 = vmatprep.subr.bf16.mxu1 %v5724_v44  ;;  %v5803_v31 = vld [vmem:[#allocation2 + $0xda0] ss:$16 sps:$4 sm:$0xff]   ;;  %v5806_v44 = vld [vmem:[#allocation2 + $0xda8] ss:$16 sps:$4 sm:$0xff]  }
 0x1b5   :  { %3513 = vmatpush1.bf16.msra.mxu0 %v5719_v47  ;;  %3841 = vmatpush1.bf16.msra.mxu1 %v5722_v48  ;;  %v5811_v47 = vld [vmem:[#allocation2 + $0xdc4] ss:$16 sps:$4 sm:$0xff]   ;;  %v5814_v48 = vld [vmem:[#allocation2 + $0xdcc] ss:$16 sps:$4 sm:$0xff]  }
 0x1b6   :  { %3523 = vmatprep.subr.bf16.mxu0 %v5727_v49  ;;  %3851 = vmatprep.subr.bf16.mxu1 %v5730_v33  ;;  %v5809_v49 = vld [vmem:[#allocation2 + $0xdc0] ss:$16 sps:$4 sm:$0xff]   ;;  %v5812_v33 = vld [vmem:[#allocation2 + $0xdc8] ss:$16 sps:$4 sm:$0xff]  }
 0x1b8   :  { %3515 = vmatmul.mubr.bf16.vlgmr.msra.gmra.mrb[0].mxu0 %v697_v50  ;;  %3843 = vmatmul.mubr.bf16.vlgmr.msra.gmra.mrb[0].mxu1 %v697_v50  ;;  %v5820_v50 = vld [vmem:[#allocation2 + $0xdec] ss:$16 sps:$4 sm:$0xff]  }
 0x1b9   :  { %3524 = vmatpush1.bf16.msra.mxu0 %v5725_v52  ;;  %3852 = vmatpush1.bf16.msra.mxu1 %v5728_v53  ;;  %v5815_v52 = vld [vmem:[#allocation2 + $0xde0] ss:$16 sps:$4 sm:$0xff]   ;;  %v5818_v53 = vld [vmem:[#allocation2 + $0xde8] ss:$16 sps:$4 sm:$0xff]  }
 0x1ba   :  { %3525 = vmatprep.subr.bf16.mxu0 %v5733_v56  ;;  %3853 = vmatprep.subr.bf16.mxu1 %v5736_v41  ;;  %v5823_v56 = vld [vmem:[#allocation2 + $0xe04] ss:$16 sps:$4 sm:$0xff]   ;;  %v5826_v41 = vld [vmem:[#allocation2 + $0xe0c] ss:$16 sps:$4 sm:$0xff]  }
 0x1bb   :  { %3555 = vmatprep.mubr.bf16.mxu0 %v6207_v57  ;;  %3883 = vmatprep.mubr.bf16.mxu1 %v6207_v57 }
 0x1bd   :  { %3526 = vmatpush1.bf16.msra.mxu0 %v5731_v58  ;;  %3854 = vmatpush1.bf16.msra.mxu1 %v5734_v59  ;;  %v6213_v58 = vrot.slane %v6200_v46, %v6132_v51  ;;  %v5821_v59 = vld [vmem:[#allocation2 + $0xe00] ss:$16 sps:$4 sm:$0xff]   ;;  %v5830_v46 = vld [vmem:[#allocation2 + $0xe28] ss:$16 sps:$4 sm:$0xff]  }
 0x1be   :  { %3527 = vmatprep.subr.bf16.mxu0 %v5739_v43  ;;  %3855 = vmatprep.subr.bf16.mxu1 %v5742_v60  ;;  %v5824_v43 = vld [vmem:[#allocation2 + $0xe08] ss:$16 sps:$4 sm:$0xff]   ;;  %v5829_v60 = vld [vmem:[#allocation2 + $0xe24] ss:$16 sps:$4 sm:$0xff]  }
 0x1c1   :  { %3528 = vmatpush1.bf16.msra.mxu0 %v5737_v61  ;;  %3856 = vmatpush1.bf16.msra.mxu1 %v5740_v62  ;;  %v5832_v61 = vld [vmem:[#allocation2 + $0xe2c] ss:$16 sps:$4 sm:$0xff]   ;;  %v700_v62 = vcombine.high %v6207_v57, %v6207_v57  ;;  %v5841_v57 = vld [vmem:[#allocation2 + $0xe64] ss:$16 sps:$4 sm:$0xff]  }
 0x1c2   :  { %3529 = vmatprep.subr.bf16.mxu0 %v5745_v63  ;;  %3857 = vmatprep.subr.bf16.mxu1 %v5748_v0  ;;  %v5827_v63 = vld [vmem:[#allocation2 + $0xe20] ss:$16 sps:$4 sm:$0xff]   ;;  %v5835_v0 = vld [vmem:[#allocation2 + $0xe44] ss:$16 sps:$4 sm:$0xff]  }
 0x1c5   :  { %3530 = vmatpush1.bf16.msra.mxu0 %v5743_v1  ;;  %3858 = vmatpush1.bf16.msra.mxu1 %v5746_v2  ;;  %v5838_v1 = vld [vmem:[#allocation2 + $0xe4c] ss:$16 sps:$4 sm:$0xff]   ;;  %v5833_v2 = vld [vmem:[#allocation2 + $0xe40] ss:$16 sps:$4 sm:$0xff]  }
 0x1c6   :  { %3531 = vmatprep.subr.bf16.mxu0 %v5751_v3  ;;  %3859 = vmatprep.subr.bf16.mxu1 %v5754_v4  ;;  %v5836_v3 = vld [vmem:[#allocation2 + $0xe48] ss:$16 sps:$4 sm:$0xff]   ;;  %v5844_v4 = vld [vmem:[#allocation2 + $0xe6c] ss:$16 sps:$4 sm:$0xff]  }
 0x1c9   :  { %3532 = vmatpush1.bf16.msra.mxu0 %v5749_v5  ;;  %3860 = vmatpush1.bf16.msra.mxu1 %v5752_v6  ;;  %v5839_v5 = vld [vmem:[#allocation2 + $0xe60] ss:$16 sps:$4 sm:$0xff]   ;;  %v5842_v6 = vld [vmem:[#allocation2 + $0xe68] ss:$16 sps:$4 sm:$0xff]  }
 0x1ca   :  { %3533 = vmatprep.subr.bf16.mxu0 %v5757_v7  ;;  %3861 = vmatprep.subr.bf16.mxu1 %v5760_v8  ;;  %v5847_v7 = vld [vmem:[#allocation2 + $0xe84] ss:$16 sps:$4 sm:$0xff]   ;;  %v5850_v8 = vld [vmem:[#allocation2 + $0xe8c] ss:$16 sps:$4 sm:$0xff]  }
 0x1cd   :  { %3534 = vmatpush1.bf16.msra.mxu0 %v5755_v9  ;;  %3862 = vmatpush1.bf16.msra.mxu1 %v5758_v10  ;;  %v5845_v9 = vld [vmem:[#allocation2 + $0xe80] ss:$16 sps:$4 sm:$0xff]   ;;  %v5848_v10 = vld [vmem:[#allocation2 + $0xe88] ss:$16 sps:$4 sm:$0xff]  }
 0x1ce   :  { %3535 = vmatprep.subr.bf16.mxu0 %v5763_v11  ;;  %3863 = vmatprep.subr.bf16.mxu1 %v5766_v12  ;;  %v5853_v11 = vld [vmem:[#allocation2 + $0xea4] ss:$16 sps:$4 sm:$0xff]   ;;  %v5856_v12 = vld [vmem:[#allocation2 + $0xeac] ss:$16 sps:$4 sm:$0xff]  }
 0x1d1   :  { %3536 = vmatpush1.bf16.msra.mxu0 %v5761_v13  ;;  %3864 = vmatpush1.bf16.msra.mxu1 %v5764_v14  ;;  %v5851_v13 = vld [vmem:[#allocation2 + $0xea0] ss:$16 sps:$4 sm:$0xff]   ;;  %v5854_v14 = vld [vmem:[#allocation2 + $0xea8] ss:$16 sps:$4 sm:$0xff]  }
 0x1d2   :  { %3537 = vmatprep.subr.bf16.mxu0 %v5769_v16  ;;  %3865 = vmatprep.subr.bf16.mxu1 %v5772_v17  ;;  %v5859_v16 = vld [vmem:[#allocation2 + $0xec4] ss:$16 sps:$4 sm:$0xff]   ;;  %v5862_v17 = vld [vmem:[#allocation2 + $0xecc] ss:$16 sps:$4 sm:$0xff]  }
 0x1d5   :  { %3538 = vmatpush1.bf16.msra.mxu0 %v5767_v19  ;;  %3866 = vmatpush1.bf16.msra.mxu1 %v5770_v20  ;;  %v5857_v19 = vld [vmem:[#allocation2 + $0xec0] ss:$16 sps:$4 sm:$0xff]   ;;  %v5860_v20 = vld [vmem:[#allocation2 + $0xec8] ss:$16 sps:$4 sm:$0xff]  }
 0x1d6   :  { %3539 = vmatprep.subr.bf16.mxu0 %v5775_v21  ;;  %3867 = vmatprep.subr.bf16.mxu1 %v5778_v22  ;;  %v5865_v21 = vld [vmem:[#allocation2 + $0xee4] ss:$16 sps:$4 sm:$0xff]   ;;  %v5868_v22 = vld [vmem:[#allocation2 + $0xeec] ss:$16 sps:$4 sm:$0xff]  }
 0x1d9   :  { %3540 = vmatpush1.bf16.msra.mxu0 %v5773_v55  ;;  %3868 = vmatpush1.bf16.msra.mxu1 %v5776_v23  ;;  %v5863_v55 = vld [vmem:[#allocation2 + $0xee0] ss:$16 sps:$4 sm:$0xff]   ;;  %v5866_v23 = vld [vmem:[#allocation2 + $0xee8] ss:$16 sps:$4 sm:$0xff]  }
 0x1da   :  { %3541 = vmatprep.subr.bf16.mxu0 %v5781_v24  ;;  %3869 = vmatprep.subr.bf16.mxu1 %v5784_v25  ;;  %v5871_v24 = vld [vmem:[#allocation2 + $0xf04] ss:$16 sps:$4 sm:$0xff]   ;;  %v5874_v25 = vld [vmem:[#allocation2 + $0xf0c] ss:$16 sps:$4 sm:$0xff]  }
 0x1dd   :  { %3542 = vmatpush1.bf16.msra.mxu0 %v5779_v26  ;;  %3870 = vmatpush1.bf16.msra.mxu1 %v5782_v29  ;;  %v5869_v26 = vld [vmem:[#allocation2 + $0xf00] ss:$16 sps:$4 sm:$0xff]   ;;  %v5872_v29 = vld [vmem:[#allocation2 + $0xf08] ss:$16 sps:$4 sm:$0xff]  }
 0x1de   :  { %3543 = vmatprep.subr.bf16.mxu0 %v5787_v30  ;;  %3871 = vmatprep.subr.bf16.mxu1 %v5790_v15  ;;  %v5877_v30 = vld [vmem:[#allocation2 + $0xf24] ss:$16 sps:$4 sm:$0xff]   ;;  %v5880_v15 = vld [vmem:[#allocation2 + $0xf2c] ss:$16 sps:$4 sm:$0xff]  }
 0x1e1   :  { %3544 = vmatpush1.bf16.msra.mxu0 %v5785_v32  ;;  %3872 = vmatpush1.bf16.msra.mxu1 %v5788_v34  ;;  %v5875_v32 = vld [vmem:[#allocation2 + $0xf20] ss:$16 sps:$4 sm:$0xff]   ;;  %v5878_v34 = vld [vmem:[#allocation2 + $0xf28] ss:$16 sps:$4 sm:$0xff]  }
 0x1e2   :  { %3545 = vmatprep.subr.bf16.mxu0 %v5793_v35  ;;  %3873 = vmatprep.subr.bf16.mxu1 %v5796_v54  ;;  %v5883_v35 = vld [vmem:[#allocation2 + $0xf44] ss:$16 sps:$4 sm:$0xff]   ;;  %v5886_v54 = vld [vmem:[#allocation2 + $0xf4c] ss:$16 sps:$4 sm:$0xff]  }
 0x1e5   :  { %3546 = vmatpush1.bf16.msra.mxu0 %v5791_v36  ;;  %3874 = vmatpush1.bf16.msra.mxu1 %v5794_v18  ;;  %v5881_v36 = vld [vmem:[#allocation2 + $0xf40] ss:$16 sps:$4 sm:$0xff]   ;;  %v5884_v18 = vld [vmem:[#allocation2 + $0xf48] ss:$16 sps:$4 sm:$0xff]  }
 0x1e6   :  { %3547 = vmatprep.subr.bf16.mxu0 %v5799_v37  ;;  %3875 = vmatprep.subr.bf16.mxu1 %v5802_v38  ;;  %v5889_v37 = vld [vmem:[#allocation2 + $0xf64] ss:$16 sps:$4 sm:$0xff]   ;;  %v5892_v38 = vld [vmem:[#allocation2 + $0xf6c] ss:$16 sps:$4 sm:$0xff]  }
 0x1e9   :  { %3548 = vmatpush1.bf16.msra.mxu0 %v5797_v39  ;;  %3876 = vmatpush1.bf16.msra.mxu1 %v5800_v28  ;;  %v5887_v39 = vld [vmem:[#allocation2 + $0xf60] ss:$16 sps:$4 sm:$0xff]   ;;  %v5890_v28 = vld [vmem:[#allocation2 + $0xf68] ss:$16 sps:$4 sm:$0xff]  }
 0x1ea   :  { %3549 = vmatprep.subr.bf16.mxu0 %v5805_v40  ;;  %3877 = vmatprep.subr.bf16.mxu1 %v5808_v42  ;;  %v5895_v40 = vld [vmem:[#allocation2 + $0xf84] ss:$16 sps:$4 sm:$0xff]   ;;  %v5898_v42 = vld [vmem:[#allocation2 + $0xf8c] ss:$16 sps:$4 sm:$0xff]  }
 0x1ed   :  { %3550 = vmatpush1.bf16.msra.mxu0 %v5803_v31  ;;  %3878 = vmatpush1.bf16.msra.mxu1 %v5806_v44  ;;  %v5893_v31 = vld [vmem:[#allocation2 + $0xf80] ss:$16 sps:$4 sm:$0xff]   ;;  %v5896_v44 = vld [vmem:[#allocation2 + $0xf88] ss:$16 sps:$4 sm:$0xff]  }
 0x1ee   :  { %3551 = vmatprep.subr.bf16.mxu0 %v5811_v47  ;;  %3879 = vmatprep.subr.bf16.mxu1 %v5814_v48  ;;  %v5901_v47 = vld [vmem:[#allocation2 + $0xfa4] ss:$16 sps:$4 sm:$0xff]   ;;  %v5904_v48 = vld [vmem:[#allocation2 + $0xfac] ss:$16 sps:$4 sm:$0xff]  }
 0x1f1   :  { %3552 = vmatpush1.bf16.msra.mxu0 %v5809_v49  ;;  %3880 = vmatpush1.bf16.msra.mxu1 %v5812_v33  ;;  %v5899_v49 = vld [vmem:[#allocation2 + $0xfa0] ss:$16 sps:$4 sm:$0xff]   ;;  %v5902_v33 = vld [vmem:[#allocation2 + $0xfa8] ss:$16 sps:$4 sm:$0xff]  }
 0x1f2   :  { %3553 = vmatprep.subr.bf16.mxu0 %v5817_v27  ;;  %3881 = vmatprep.subr.bf16.mxu1 %v5820_v50  ;;  %v5907_v27 = vld [vmem:[#allocation2 + $0xfc4] ss:$16 sps:$4 sm:$0xff]   ;;  %v5910_v50 = vld [vmem:[#allocation2 + $0xfcc] ss:$16 sps:$4 sm:$0xff]  }
 0x1f5   :  { %3554 = vmatpush1.bf16.msra.mxu0 %v5815_v52  ;;  %3882 = vmatpush1.bf16.msra.mxu1 %v5818_v53  ;;  %v5905_v52 = vld [vmem:[#allocation2 + $0xfc0] ss:$16 sps:$4 sm:$0xff]   ;;  %v5908_v53 = vld [vmem:[#allocation2 + $0xfc8] ss:$16 sps:$4 sm:$0xff]  }
 0x1f6   :  { %3564 = vmatprep.subr.bf16.mxu0 %v5823_v56  ;;  %3892 = vmatprep.subr.bf16.mxu1 %v5826_v41  ;;  %v5913_v56 = vld [vmem:[#allocation2 + $0xfe4] ss:$16 sps:$4 sm:$0xff]   ;;  %v5916_v41 = vld [vmem:[#allocation2 + $0xfec] ss:$16 sps:$4 sm:$0xff]  }
 0x1f8   :  { %3556 = vmatmul.mubr.bf16.vlgmr.msra.gmra.mrb[0].mxu0 %v6213_v58  ;;  %3884 = vmatmul.mubr.bf16.vlgmr.msra.gmra.mrb[0].mxu1 %v6213_v58 }
 0x1f9   :  { %3565 = vmatpush1.bf16.msra.mxu0 %v5821_v59  ;;  %3893 = vmatpush1.bf16.msra.mxu1 %v5824_v43  ;;  %v5911_v59 = vld [vmem:[#allocation2 + $0xfe0] ss:$16 sps:$4 sm:$0xff]   ;;  %v5914_v43 = vld [vmem:[#allocation2 + $0xfe8] ss:$16 sps:$4 sm:$0xff]  }
 0x1fa   :  { %3566 = vmatprep.subr.bf16.mxu0 %v5829_v60  ;;  %3894 = vmatprep.subr.bf16.mxu1 %v5832_v61  ;;  %v698_v60 = vcombine.high %v6213_v58, %v6213_v58  ;;  %v5917_v61 = vld [vmem:[#allocation7 + $0x40] sm:$0xff]   ;;  %v5925_v58 = vld [vmem:[#allocation7 + $0x50] sm:$0xff]  }
 0x1fb   :  { %3596 = vmatprep.mubr.bf16.mxu0 %v700_v62  ;;  %3924 = vmatprep.mubr.bf16.mxu1 %v700_v62  ;;  %v5918_v62 = vld [vmem:[#allocation7 + $0xc0] sm:$0xff]  }
 0x1fd   :  { %3567 = vmatpush1.bf16.msra.mxu0 %v5827_v63  ;;  %3895 = vmatpush1.bf16.msra.mxu1 %v5830_v46  ;;  %v5919_v63 = vld [vmem:[#allocation7] sm:$0xff]  }
 0x1fe   :  { %3568 = vmatprep.subr.bf16.mxu0 %v5835_v0  ;;  %3896 = vmatprep.subr.bf16.mxu1 %v5838_v1  ;;  %v5920_v46 = vld [vmem:[#allocation7 + $0x80] sm:$0xff]   ;;  %v5921_v0 = vld [vmem:[#allocation7 + $0x48] sm:$0xff]  }
 0x1ff   :  { %v5922_v1 = vld [vmem:[#allocation7 + $0xc8] sm:$0xff]  }
 0x201   :  { %3569 = vmatpush1.bf16.msra.mxu0 %v5833_v2  ;;  %3897 = vmatpush1.bf16.msra.mxu1 %v5836_v3  ;;  %v5923_v2 = vld [vmem:[#allocation7 + $0x8] sm:$0xff]  }
 0x202   :  { %3570 = vmatprep.subr.bf16.mxu0 %v5841_v57  ;;  %3898 = vmatprep.subr.bf16.mxu1 %v5844_v4  ;;  %v5924_v3 = vld [vmem:[#allocation7 + $0x88] sm:$0xff]   ;;  %v5926_v57 = vld [vmem:[#allocation7 + $0xd0] sm:$0xff]  }
 0x203   :  { %v5927_v4 = vld [vmem:[#allocation7 + $0x10] sm:$0xff]  }
 0x205   :  { %3571 = vmatpush1.bf16.msra.mxu0 %v5839_v5  ;;  %3899 = vmatpush1.bf16.msra.mxu1 %v5842_v6  ;;  %v5928_v5 = vld [vmem:[#allocation7 + $0x90] sm:$0xff]   ;;  %v5929_v6 = vld [vmem:[#allocation7 + $0x58] sm:$0xff]  }
 0x206   :  { %3572 = vmatprep.subr.bf16.mxu0 %v5847_v7  ;;  %3900 = vmatprep.subr.bf16.mxu1 %v5850_v8  ;;  %v5930_v7 = vld [vmem:[#allocation7 + $0xd8] sm:$0xff]  }
 0x207   :  { %v5931_v8 = vld [vmem:[#allocation7 + $0x18] sm:$0xff]  }
 0x209   :  { %3573 = vmatpush1.bf16.msra.mxu0 %v5845_v9  ;;  %3901 = vmatpush1.bf16.msra.mxu1 %v5848_v10  ;;  %v5932_v9 = vld [vmem:[#allocation7 + $0x98] sm:$0xff]   ;;  %v5933_v10 = vld [vmem:[#allocation7 + $0x60] sm:$0xff]  }
 0x20a   :  { %3574 = vmatprep.subr.bf16.mxu0 %v5853_v11  ;;  %3902 = vmatprep.subr.bf16.mxu1 %v5856_v12  ;;  %v5934_v11 = vld [vmem:[#allocation7 + $0xe0] sm:$0xff]  }
 0x20b   :  { %v5935_v12 = vld [vmem:[#allocation7 + $0x20] sm:$0xff]  }
 0x20d   :  { %3575 = vmatpush1.bf16.msra.mxu0 %v5851_v13  ;;  %3903 = vmatpush1.bf16.msra.mxu1 %v5854_v14  ;;  %v5936_v13 = vld [vmem:[#allocation7 + $0xa0] sm:$0xff]   ;;  %v5937_v14 = vld [vmem:[#allocation7 + $0x68] sm:$0xff]  }
 0x20e   :  { %3576 = vmatprep.subr.bf16.mxu0 %v5859_v16  ;;  %3904 = vmatprep.subr.bf16.mxu1 %v5862_v17  ;;  %v5938_v16 = vld [vmem:[#allocation7 + $0xe8] sm:$0xff]  }
 0x20f   :  { %v5939_v17 = vld [vmem:[#allocation7 + $0x28] sm:$0xff]  }
 0x211   :  { %3577 = vmatpush1.bf16.msra.mxu0 %v5857_v19  ;;  %3905 = vmatpush1.bf16.msra.mxu1 %v5860_v20  ;;  %v5940_v19 = vld [vmem:[#allocation7 + $0xa8] sm:$0xff]   ;;  %v5941_v20 = vld [vmem:[#allocation7 + $0x70] sm:$0xff]  }
 0x212   :  { %3578 = vmatprep.subr.bf16.mxu0 %v5865_v21  ;;  %3906 = vmatprep.subr.bf16.mxu1 %v5868_v22  ;;  %v5942_v21 = vld [vmem:[#allocation7 + $0xf0] sm:$0xff]  }
 0x213   :  { %v5943_v22 = vld [vmem:[#allocation7 + $0x30] sm:$0xff]  }
 0x215   :  { %3579 = vmatpush1.bf16.msra.mxu0 %v5863_v55  ;;  %3907 = vmatpush1.bf16.msra.mxu1 %v5866_v23  ;;  %v5944_v55 = vld [vmem:[#allocation7 + $0xb0] sm:$0xff]   ;;  %v5945_v23 = vld [vmem:[#allocation7 + $0x78] sm:$0xff]  }
 0x216   :  { %3580 = vmatprep.subr.bf16.mxu0 %v5871_v24  ;;  %3908 = vmatprep.subr.bf16.mxu1 %v5874_v25  ;;  %v5946_v24 = vld [vmem:[#allocation7 + $0xf8] sm:$0xff]  }
 0x217   :  { %v5947_v25 = vld [vmem:[#allocation7 + $0x38] sm:$0xff]  }
 0x219   :  { %3581 = vmatpush1.bf16.msra.mxu0 %v5869_v26  ;;  %3909 = vmatpush1.bf16.msra.mxu1 %v5872_v29  ;;  %v5948_v26 = vld [vmem:[#allocation7 + $0xb8] sm:$0xff]   ;;  %v6222_v29 = vsub.s32 0, %v6129_v45 }
 0x21a   :  { %3582 = vmatprep.subr.bf16.mxu0 %v5877_v30  ;;  %3910 = vmatprep.subr.bf16.mxu1 %v5880_v15  ;;  %v6225_v30 = vsub.s32 2, %v6129_v45  ;;  %v574_v15 = vld [vmem:[#allocation5] ss:$8 sm:$0xf] }
 0x21d   :  { %3583 = vmatpush1.bf16.msra.mxu0 %v5875_v32  ;;  %3911 = vmatpush1.bf16.msra.mxu1 %v5878_v34  ;;  %v6228_v32 = vsub.s32 1, %v6129_v45  ;;  %v6231_v34 = vsub.s32 3, %v6129_v45 }
 0x21e   :  { %3584 = vmatprep.subr.bf16.mxu0 %v5883_v35  ;;  %3912 = vmatprep.subr.bf16.mxu1 %v5886_v54  ;;  %v584_v35 = vrot.slane %v574_v15, %v6222_v29  ;;  %v592_v54 = vrot.slane %v574_v15, %v6225_v30 }
 0x221   :  { %3585 = vmatpush1.bf16.msra.mxu0 %v5881_v36  ;;  %3913 = vmatpush1.bf16.msra.mxu1 %v5884_v18  ;;  %v588_v36 = vrot.slane %v574_v15, %v6228_v32  ;;  %v596_v18 = vrot.slane %v574_v15, %v6231_v34 }
 0x222   :  { %3586 = vmatprep.subr.bf16.mxu0 %v5889_v37  ;;  %3914 = vmatprep.subr.bf16.mxu1 %v5892_v38 }
 0x225   :  { %3587 = vmatpush1.bf16.msra.mxu0 %v5887_v39  ;;  %3915 = vmatpush1.bf16.msra.mxu1 %v5890_v28 }
 0x226   :  { %3588 = vmatprep.subr.bf16.mxu0 %v5895_v40  ;;  %3916 = vmatprep.subr.bf16.mxu1 %v5898_v42 }
 0x229   :  { %3589 = vmatpush1.bf16.msra.mxu0 %v5893_v31  ;;  %3917 = vmatpush1.bf16.msra.mxu1 %v5896_v44 }
 0x22a   :  { %3590 = vmatprep.subr.bf16.mxu0 %v5901_v47  ;;  %3918 = vmatprep.subr.bf16.mxu1 %v5904_v48 }
 0x22d   :  { %3591 = vmatpush1.bf16.msra.mxu0 %v5899_v49  ;;  %3919 = vmatpush1.bf16.msra.mxu1 %v5902_v33 }
 0x22e   :  { %3592 = vmatprep.subr.bf16.mxu0 %v5907_v27  ;;  %3920 = vmatprep.subr.bf16.mxu1 %v5910_v50 }
 0x231   :  { %3593 = vmatpush1.bf16.msra.mxu0 %v5905_v52  ;;  %3921 = vmatpush1.bf16.msra.mxu1 %v5908_v53 }
 0x232   :  { %3594 = vmatprep.subr.bf16.mxu0 %v5913_v56  ;;  %3922 = vmatprep.subr.bf16.mxu1 %v5916_v41 }
 0x235   :  { %3595 = vmatpush1.bf16.msra.mxu0 %v5911_v59  ;;  %3923 = vmatpush1.bf16.msra.mxu1 %v5914_v43 }
 0x236   :  { %5035 = vmatprep.subr.bf16.mxu0 %v5917_v61  ;;  %5057 = vmatprep.subr.bf16.mxu1 %v5918_v62 }
 0x238   :  { %3597 = vmatmul.mubr.bf16.vlgmr.msra.gmra.mrb[0].mxu0 %v698_v60  ;;  %3925 = vmatmul.mubr.bf16.vlgmr.msra.gmra.mrb[0].mxu1 %v698_v60 }
 0x239   :  { %5036 = vmatpush3.bf16.msra.mxu0 %v5919_v63  ;;  %5058 = vmatpush3.bf16.msra.mxu1 %v5920_v46 }
 0x23a   :  { %5037 = vmatprep.subr.bf16.mxu0 %v5921_v0  ;;  %5059 = vmatprep.subr.bf16.mxu1 %v5922_v1 }
 0x23d   :  { %5038 = vmatpush3.bf16.msra.mxu0 %v5923_v2  ;;  %5060 = vmatpush3.bf16.msra.mxu1 %v5924_v3 }
 0x23e   :  { %5039 = vmatprep.subr.bf16.mxu0 %v5925_v58  ;;  %5061 = vmatprep.subr.bf16.mxu1 %v5926_v57 }
 0x241   :  { %5040 = vmatpush3.bf16.msra.mxu0 %v5927_v4  ;;  %5062 = vmatpush3.bf16.msra.mxu1 %v5928_v5 }
 0x242   :  { %5041 = vmatprep.subr.bf16.mxu0 %v5929_v6  ;;  %5063 = vmatprep.subr.bf16.mxu1 %v5930_v7 }
 0x245   :  { %5042 = vmatpush3.bf16.msra.mxu0 %v5931_v8  ;;  %5064 = vmatpush3.bf16.msra.mxu1 %v5932_v9 }
 0x246   :  { %5043 = vmatprep.subr.bf16.mxu0 %v5933_v10  ;;  %5065 = vmatprep.subr.bf16.mxu1 %v5934_v11 }
 0x249   :  { %5044 = vmatpush3.bf16.msra.mxu0 %v5935_v12  ;;  %5066 = vmatpush3.bf16.msra.mxu1 %v5936_v13 }
 0x24a   :  { %5045 = vmatprep.subr.bf16.mxu0 %v5937_v14  ;;  %5067 = vmatprep.subr.bf16.mxu1 %v5938_v16 }
 0x24d   :  { %5046 = vmatpush3.bf16.msra.mxu0 %v5939_v17  ;;  %5068 = vmatpush3.bf16.msra.mxu1 %v5940_v19 }
 0x24e   :  { %5047 = vmatprep.subr.bf16.mxu0 %v5941_v20  ;;  %5069 = vmatprep.subr.bf16.mxu1 %v5942_v21 }
 0x251   :  { %5048 = vmatpush3.bf16.msra.mxu0 %v5943_v22  ;;  %5070 = vmatpush3.bf16.msra.mxu1 %v5944_v55 }
 0x252   :  { %5049 = vmatprep.subr.bf16.mxu0 %v5945_v23  ;;  %5071 = vmatprep.subr.bf16.mxu1 %v5946_v24 }
 0x255   :  { %5050 = vmatpush3.bf16.msra.mxu0 %v5947_v25  ;;  %5072 = vmatpush3.bf16.msra.mxu1 %v5948_v26 }
 0x30b   :  { %v3598_v37 = vpop.f32.mrb[0].mxu0  ;;  %v3926_v38 = vpop.f32.mrb[0].mxu1 }
 0x30c   :  { %v6237_v39 = vadd.f32 %v3598_v37, %v584_v35  ;;  %v6239_v28 = vadd.f32 %v3926_v38, %v592_v54  ;;  %v3600_v40 = vpop.f32.mrb[1].mxu0  ;;  %v3928_v42 = vpop.f32.mrb[1].mxu1 }
 0x30d   :  { %v6241_v31 = vadd.f32 %v3600_v40, %v588_v36  ;;  %v6243_v45 = vadd.f32 %v3928_v42, %v596_v18  ;;  %v3602_v44 = vpop.f32.mrb[2].mxu0  ;;  %v3930_v47 = vpop.f32.mrb[2].mxu1 }
 0x30e   :  { %v3934_v48 = vsel %vm3933_vm0, %v6237_v39, 0.0  ;;  %v3948_v49 = vsel %vm3933_vm0, %v6239_v28, 0.0  ;;  %v3603_v33 = vpop.f32.mrb[3].mxu0  ;;  %v3931_v27 = vpop.f32.mrb[3].mxu1 }
 0x30f   :  { %v3935_v50 = vrot.slane %v3934_v48, 4  ;;  %v3949_v52 = vrot.slane %v3948_v49, 4  ;;  %v3941_v53 = vsel %vm3933_vm0, %v6241_v31, 0.0  ;;  %v3955_v56 = vsel %vm3933_vm0, %v6243_v45, 0.0 }
 0x310   :  { %v3942_v41 = vrot.slane %v3941_v53, 4  ;;  %v3956_v59 = vrot.slane %v3955_v56, 4 }
 0x311   :  { %v3936_v43 = vadd.f32 %v3935_v50, %v3934_v48  ;;  %v3950_v60 = vadd.f32 %v3949_v52, %v3948_v49 }
 0x312   :  { %v3943_v61 = vadd.f32 %v3942_v41, %v3941_v53  ;;  %v3957_v62 = vadd.f32 %v3956_v59, %v3955_v56 }
 0x313   :  { %v3937_v63 = vrot.slane %v3936_v43, 2  ;;  %v3951_v46 = vrot.slane %v3950_v60, 2 }
 0x314   :  { %v3944_v0 = vrot.slane %v3943_v61, 2  ;;  %v3958_v1 = vrot.slane %v3957_v62, 2 }
 0x315   :  { %v3938_v2 = vadd.f32 %v3937_v63, %v3936_v43  ;;  %v3952_v3 = vadd.f32 %v3951_v46, %v3950_v60 }
 0x316   :  { %v3945_v58 = vadd.f32 %v3944_v0, %v3943_v61  ;;  %v3959_v57 = vadd.f32 %v3958_v1, %v3957_v62 }
 0x317   :  { %v3939_v4 = vrot.slane %v3938_v2, 1  ;;  %v3953_v5 = vrot.slane %v3952_v3, 1 }
 0x318   :  { %v3946_v6 = vrot.slane %v3945_v58, 1  ;;  %v3960_v7 = vrot.slane %v3959_v57, 1 }
 0x319   :  { %v3940_v8 = vadd.f32 %v3939_v4, %v3938_v2  ;;  %v3954_v9 = vadd.f32 %v3953_v5, %v3952_v3 }
 0x31a   :  { %v3947_v10 = vadd.f32 %v3946_v6, %v3945_v58  ;;  %v3961_v11 = vadd.f32 %v3960_v7, %v3959_v57 }
 0x31b   :  { %v6253_v12 = vmul.f32 0.5, %v3940_v8  ;;  %v6255_v13 = vmul.f32 0.5, %v3954_v9 }
 0x31c   :  { %v6257_v14 = vmul.f32 0.5, %v3947_v10  ;;  %v6259_v16 = vmul.f32 0.5, %v3961_v11 }
 0x31d   :  { %v3967_v17 = vsub.f32 %v6237_v39, %v6253_v12  ;;  %v3969_v19 = vsub.f32 %v6239_v28, %v6255_v13 }
 0x31e   :  { %v3968_v20 = vsub.f32 %v6241_v31, %v6257_v14  ;;  %v3970_v21 = vsub.f32 %v6243_v45, %v6259_v16 }
 0x31f   :  { %v3971_v22 = vmul.f32 %v3967_v17, %v3967_v17  ;;  %v3973_v55 = vmul.f32 %v3969_v19, %v3969_v19 }
 0x320   :  { %v3972_v23 = vmul.f32 %v3968_v20, %v3968_v20  ;;  %v3974_v24 = vmul.f32 %v3970_v21, %v3970_v21  ;;  %v576_v20 = vld [vmem:[#allocation5 + $0x1] ss:$8 sm:$0xf] }
 0x321   :  { %v3975_v25 = vsel %vm3933_vm0, %v3971_v22, 0.0  ;;  %v3989_v26 = vsel %vm3933_vm0, %v3973_v55, 0.0 }
 0x322   :  { %v3976_v15 = vrot.slane %v3975_v25, 4  ;;  %v3990_v35 = vrot.slane %v3989_v26, 4  ;;  %v3982_v54 = vsel %vm3933_vm0, %v3972_v23, 0.0  ;;  %v3996_v36 = vsel %vm3933_vm0, %v3974_v24, 0.0 }
 0x323   :  { %v3983_v18 = vrot.slane %v3982_v54, 4  ;;  %v3997_v37 = vrot.slane %v3996_v36, 4 }
 0x324   :  { %v3977_v38 = vadd.f32 %v3976_v15, %v3975_v25  ;;  %v3991_v40 = vadd.f32 %v3990_v35, %v3989_v26 }
 0x325   :  { %v3984_v42 = vadd.f32 %v3983_v18, %v3982_v54  ;;  %v3998_v44 = vadd.f32 %v3997_v37, %v3996_v36 }
 0x326   :  { %v3978_v47 = vrot.slane %v3977_v38, 2  ;;  %v3992_v48 = vrot.slane %v3991_v40, 2 }
 0x327   :  { %v3985_v49 = vrot.slane %v3984_v42, 2  ;;  %v3999_v33 = vrot.slane %v3998_v44, 2 }
 0x328   :  { %v3979_v27 = vadd.f32 %v3978_v47, %v3977_v38  ;;  %v3993_v50 = vadd.f32 %v3992_v48, %v3991_v40 }
 0x329   :  { %v3986_v52 = vadd.f32 %v3985_v49, %v3984_v42  ;;  %v4000_v53 = vadd.f32 %v3999_v33, %v3998_v44 }
 0x32a   :  { %v3980_v56 = vrot.slane %v3979_v27, 1  ;;  %v3994_v41 = vrot.slane %v3993_v50, 1 }
 0x32b   :  { %v3987_v59 = vrot.slane %v3986_v52, 1  ;;  %v4001_v43 = vrot.slane %v4000_v53, 1 }
 0x32c   :  { %v3981_v60 = vadd.f32 %v3980_v56, %v3979_v27  ;;  %v3995_v61 = vadd.f32 %v3994_v41, %v3993_v50 }
 0x32d   :  { %v3988_v62 = vadd.f32 %v3987_v59, %v3986_v52  ;;  %v4002_v63 = vadd.f32 %v4001_v43, %v4000_v53 }
 0x32e   :  { %v4003_v46 = vmul.f32 0.5, %v3981_v60  ;;  %v4005_v0 = vmul.f32 0.5, %v3995_v61 }
 0x32f   :  { %v4004_v1 = vmul.f32 0.5, %v3988_v62  ;;  %v4006_v2 = vmul.f32 0.5, %v4002_v63 }
 0x330   :  { %v4007_v3 = vadd.f32 1e-05, %v4003_v46  ;;  %v4009_v58 = vadd.f32 1e-05, %v4005_v0 }
 0x331   :  { %v4008_v57 = vadd.f32 1e-05, %v4004_v1  ;;  %v4010_v4 = vadd.f32 1e-05, %v4006_v2 }
 0x332   :  { %5949 = vrsqrt.f32 %v4007_v3 }
 0x333   :  { %5951 = vrsqrt.f32 %v4009_v58 }
 0x334   :  { %5953 = vrsqrt.f32 %v4008_v57 }
 0x335   :  { %5955 = vrsqrt.f32 %v4010_v4 }
 0x33c   :  { %v5950_v5 = vpop.eup %5949 }
 0x33d   :  { %v5952_v6 = vpop.eup %5951 }
 0x33e   :  { %v5954_v7 = vpop.eup %5953 }
 0x33f   :  { %v5956_v8 = vpop.eup %5955  ;;  %v4019_v9 = vcombine.low %v5950_v5, %v5954_v7 }
 0x340   :  { %v4020_v10 = vcombine.low %v5952_v6, %v5956_v8 }
 0x341   :  { %v4027_v11 = vrot.slane %v4019_v9, %v6132_v51 }
 0x342   :  { %v4034_v17 = vrot.slane %v4020_v10, %v6132_v51 }
 0x344   :  { %v4035_v19 = vcombine.low %v4027_v11, %v4034_v17 }
 0x346   :  { %v4042_v21 = vrot.slane %v4035_v19, %v6132_v51 }
 0x348   :  { %v4044_v22 = vmul.f32 %v4042_v21, %v576_v20 }
 0x34a   :  { %v4057_v55 = vrot.slane %v4044_v22, %v6225_v30  ;;  %v4061_v23 = vrot.slane %v4044_v22, %v6231_v34  ;;  %v4049_v24 = vrot.slane %v4044_v22, %v6222_v29  ;;  %v4053_v25 = vrot.slane %v4044_v22, %v6228_v32 }
 0x34c   :  { %v4068_v26 = vmul.f32 %v4057_v55, %v6255_v13  ;;  %v4069_v15 = vmul.f32 %v4061_v23, %v6259_v16  ;;  %v4103_v35 = vmul.f32 %v6243_v45, %v4061_v23  ;;  %v4066_v54 = vmul.f32 %v4049_v24, %v6253_v12  ;;  %v578_v16 = vld [vmem:[#allocation5 + $0x2] ss:$8 sm:$0xf] }
 0x34d   :  { %v4067_v36 = vmul.f32 %v4053_v25, %v6257_v14  ;;  %v4101_v18 = vmul.f32 %v6241_v31, %v4053_v25  ;;  %v4100_v37 = vmul.f32 %v6237_v39, %v4049_v24  ;;  %v4102_v38 = vmul.f32 %v6239_v28, %v4057_v55 }
 0x34e   :  { %v4075_v40 = vcombine.low %v4068_v26, %v4069_v15 }
 0x34f   :  { %v4074_v42 = vcombine.low %v4066_v54, %v4067_v36 }
 0x350   :  { %v4089_v44 = vrot.slane %v4075_v40, %v6132_v51 }
 0x351   :  { %v4082_v13 = vrot.slane %v4074_v42, %v6132_v51 }
 0x353   :  { %v4090_v47 = vcombine.low %v4082_v13, %v4089_v44 }
 0x355   :  { %v4097_v45 = vrot.slane %v4090_v47, %v6132_v51 }
 0x357   :  { %v4099_v48 = vsub.f32 %v578_v16, %v4097_v45 }
 0x359   :  { %v4112_v12 = vrot.slane %v4099_v48, %v6228_v32  ;;  %v4120_v14 = vrot.slane %v4099_v48, %v6231_v34  ;;  %v4108_v31 = vrot.slane %v4099_v48, %v6222_v29  ;;  %v4116_v39 = vrot.slane %v4099_v48, %v6225_v30  ;;  %v579_v34 = vld [vmem:[#allocation5 + $0x3] ss:$0 sm:$0xff] }
 0x35b   :  { %v4126_v28 = vadd.f32 %v4112_v12, %v4101_v18  ;;  %v4128_v49 = vadd.f32 %v4120_v14, %v4103_v35  ;;  %v4125_v33 = vadd.f32 %v4108_v31, %v4100_v37  ;;  %v4127_v27 = vadd.f32 %v4116_v39, %v4102_v38 }
 0x35d   :  { %v4130_v50 = vmax.f32 %v4126_v28, 0.0  ;;  %v4132_v52 = vmax.f32 %v4128_v49, 0.0  ;;  %v4129_v53 = vmax.f32 %v4125_v33, 0.0  ;;  %v4131_v56 = vmax.f32 %v4127_v27, 0.0 }
 0x35f   :  { %v4134_v41 = vpack.c.bf16 %v4130_v50, %v4130_v50  ;;  %v4136_v59 = vpack.c.bf16 %v4132_v52, %v4132_v52  ;;  %v4133_v51 = vpack.c.bf16 %v4129_v53, %v4129_v53  ;;  %v4135_v43 = vpack.c.bf16 %v4131_v56, %v4131_v56 }
 0x361   :  { %4425 = vmatprep.mubr.bf16.mxu0 %v4134_v41  ;;  %4465 = vmatprep.mubr.bf16.mxu1 %v4136_v59 }
 0x362   :  { %4426 = vmatmul.mubr.bf16.vlgmr.msra.gmra.mrb[4].mxu0 %v4133_v51  ;;  %4466 = vmatmul.mubr.bf16.vlgmr.msra.gmra.mrb[4].mxu1 %v4135_v43 }
 0x435   :  { %v5051_v32 = vpop.f32.mrb[4].mxu0  ;;  %v5073_v29 = vpop.f32.mrb[4].mxu1 }
 0x436   :  { %v5052_v30 = vpop.f32.mrb[5].mxu0  ;;  %v5074_v60 = vpop.f32.mrb[5].mxu1 }
 0x437   :  { %v5053_v61 = vadd.f32 %v5052_v30, %v5051_v32  ;;  %v5075_v62 = vadd.f32 %v5074_v60, %v5073_v29  ;;  %v5054_v63 = vpop.f32.mrb[6].mxu0  ;;  %v5076_v46 = vpop.f32.mrb[6].mxu1 }
 0x438   :  { %v5055_v0 = vpop.f32.mrb[7].mxu0  ;;  %v5077_v1 = vpop.f32.mrb[7].mxu1 }
 0x439   :  { %v4428_v2 = vadd.f32 %v5053_v61, %v579_v34 }
 0x43b   :  { %v4468_v3 = vadd.f32 %v5075_v62, %v4428_v2 }
 0x43d   :  { %v4473_v58 = vmax.f32 %v4468_v3, 0.0 }
 0x43f   :  { %4474 = vst [vmem:[#allocation8] sm:$0x3] %v4473_v58 }
 0x440   :  { %6034 = shalt.err (!%p6031_p0)
}
 0x441   :  { %s6035_s8 = scalar_lea.hbm %s6311_s4, 32 }
 0x442   :  { %p6036_p1 = scmp.ne.s32.totalorder %s6311_s4, %s6035_s8  ;;  %p6039_p2 = scmp.lt.u32.totalorder %s6035_s8, %s6311_s4 }
 0x444   :  { %p6041_p3 = pnand %p6039_p2, %p6036_p1 }
 0x446   :  { %6044 = shalt.err (!%p6041_p3)
}
 0x447   :  { %4484 = dma.vmem_to_hbm [thread:$0]  %s4482_s30, 32, %s6311_s4, [#allocation4]  }
 0x448   :  { %6049 = dma.done.wait [#allocation4], 32  }
 0x449   :  { %6050 = vsyncadd [#allocation4], 4294967264 }
 0x44a   :  { %4488 = vsyncpa [#allocation3], 1 }
 0x44b   :  { %4489 = vsyncpa [#allocation6], 1 }
 0x44c   :  { %4490 = vsyncpa [#allocation4], 1 }

</bundles_post_ra>
